<compile_context>
chip_gen: v7x
topology: tpu7x:2x2x1
jax: 0.10.0
libtpu: 0.0.40
codegen_flags: <defaults>
</compile_context>

<pallas_src>
import numpy as np

import jax
import jax.numpy as jnp
from jax import lax
from jax.scipy.linalg import solve_triangular
from jax.experimental import pallas as pl
from jax.experimental.pallas import tpu as pltpu


# ~8 MiB of patch data per grid step: big enough to amortize the ~0.35 us/step pipeline overhead
# even at v7x HBM speeds; v5e/v6e are already >85% of roofline well below this. Double-buffered
# this is ~16 MiB of VMEM, comfortably inside v7x's 64 MiB physical / 40 MiB requested limit.
_SLAB_BYTES = 8 * 1024 * 1024


def _cdiv(a, b):
    return -(-a // b)


def _pick_tiling(M, KP, n_split):
    """Choose (tm, M_pad, n_tiles): lane-aligned (multiple-of-128) M tiles of ~_SLAB_BYTES each,
    with n_tiles divisible by n_split and M padded by fewer than 128*n_tiles zero columns, so the
    grid never sees a ragged tile and padding traffic is negligible."""
    cap_cols = max(128, (_SLAB_BYTES // (KP * 2)) // 128 * 128)
    n_tiles = n_split * max(1, _cdiv(M, n_split * cap_cols))
    tm = _cdiv(M, n_tiles * 128) * 128
    return tm, n_tiles * tm, n_tiles


# ----------------------------------------------------------------------------
# Pallas kernel: fused Gram matrix  G = Xa Xa^T, reduced over M tiles
# ----------------------------------------------------------------------------
def _gram_kernel(xa_ref, o_ref, acc_ref):
    m = pl.program_id(2)

    @pl.when(m == 0)
    def _init():
        acc_ref[...] = jnp.zeros_like(acc_ref)

    a = xa_ref[...]                                     # (KP, tm) bf16 : taps x patch-tile
    acc_ref[...] += lax.dot_general(                    # a @ a^T on the MXU, f32 accumulation
        a, a, (((1,), (1,)), ((), ())), preferred_element_type=jnp.float32)

    @pl.when(m == pl.num_programs(2) - 1)
    def _finalize():
        o_ref[...] = acc_ref[...]


def gram_pallas(xa_bf, KP, tm, n_split):
    """xa_bf: (N, KP, M_pad) bf16 transposed patch matrix.  Returns partial Gram matrices of
    shape (n_split, N, KP, KP) f32; summing over axis 0 gives G = Xa Xa^T."""
    N, _, M_pad = xa_bf.shape
    n_tiles = M_pad // tm
    tiles_per_split = n_tiles // n_split
    grid = (n_split, N, tiles_per_split)
    flops = 2 * N * M_pad * KP * KP
    bytes_accessed = xa_bf.size * 2 + n_split * N * KP * KP * 4
    return pl.pallas_call(
        _gram_kernel,
        out_shape=jax.ShapeDtypeStruct((n_split, N, KP, KP), jnp.float32),
        grid=grid,
        in_specs=[
            pl.BlockSpec((None, KP, tm),
                         lambda s, b, m: (b, 0, s * tiles_per_split + m)),
        ],
        out_specs=pl.BlockSpec((None, None, KP, KP), lambda s, b, m: (s, b, 0, 0)),
        scratch_shapes=[pltpu.VMEM((KP, KP), jnp.float32)],
        compiler_params=pltpu.CompilerParams(
            dimension_semantics=("parallel", "parallel", "arbitrary"),
            vmem_limit_bytes=40 * 1024 * 1024,   # 2 x ~8 MiB double-buffered input + headroom
            allow_input_fusion=[True],           # let the bf16 cast/pad producer fuse in
        ),
        cost_estimate=pl.CostEstimate(
            flops=flops, transcendentals=0, bytes_accessed=bytes_accessed),
    )(xa_bf)


# ----------------------------------------------------------------------------
# JAX glue: unfold (im2col) + cropping exactly as in SolveLS.forward
# ----------------------------------------------------------------------------
def _extract_patch_rows(x_off, D, sf):
    """Xt: (N, D*D, C*Hc*Wc) bf16 — the transposed F.unfold patch matrix (tap order kh*D+kw)."""
    # TODO(synk): the remaining structural win is fusing this im2col into the Pallas kernel
    # (halo-tiled image blocks + in-kernel strided tap slices) so the D^2x-inflated matrix is
    # never materialized; the interim mitigation is building it directly in bf16 (half the HBM
    # bytes) and allowing XLA to fuse the producer into the pallas_call input.
    N, C, Hoff, Woff = x_off.shape
    Hc = (Hoff - D) // sf + 1
    Wc = (Woff - D) // sf + 1
    taps = []
    for kh in range(D):
        for kw in range(D):
            taps.append(x_off[:, :, kh:kh + sf * (Hc - 1) + 1:sf,
                                    kw:kw + sf * (Wc - 1) + 1:sf])      # (N, C, Hc, Wc)
    Xt = jnp.stack(taps, axis=1).reshape(N, D * D, C * Hc * Wc)
    return Xt, Hc, Wc


def _build_system_inputs(x, d, y, alpha, sf):
    """Shared preprocessing for both the Pallas path and the XLA reference path."""
    assert x.shape[2] == 1, "forward() expects the kernel-solve layout x: (N, C_out, 1, H, W)"
    N, C_out = x.shape[:2]
    D = d.shape[-1]
    K2 = D * D
    offset = 1 if sf in (2, 3) else 3
    x_off = x[:, :, 0, offset:, offset:].astype(jnp.bfloat16)          # bf16 BEFORE the blowup
    Xt, Hc, Wc = _extract_patch_rows(x_off, D, sf)                     # (N, K2, M) bf16
    lo = 2 if sf in (3, 4) else 3
    y_row = (y[:, :, 0, lo:Hc + lo, lo:Wc + lo].astype(jnp.bfloat16)
             .reshape(N, 1, C_out * Hc * Wc))
    XaT = jnp.concatenate([Xt, y_row], axis=1)                         # (N, K2+1, M) bf16
    alpha_b = alpha.reshape(N).astype(jnp.float32)
    d_flat = d.reshape(N, -1).astype(jnp.float32)
    assert d_flat.shape[1] == K2, "forward() requires C_out == C_in == 1 for d (as in the module)"
    return XaT, alpha_b, d_flat, K2, D


def _regularize_and_solve(G, alpha_b, d_flat, stage, N, D):
    K2 = D * D
    # tiny XLA epilogue: alpha*I on the xtx diagonal, alpha*vec(d) on the xty column
    xtx = G[:, :K2, :K2] + alpha_b[:, None, None] * jnp.eye(K2, dtype=jnp.float32)
    xty = G[:, :K2, K2:K2 + 1] + (alpha_b[:, None] * d_flat)[:, :, None]
    # TODO(synk): torch uses linalg.lstsq(driver='gelsd') on CPU inside try/except with a fallback
    # to the input d; that host round-trip / data-dependent exception path has no Pallas or XLA
    # equivalent. The alpha-regularized system has full column rank, so QR least squares
    # (stage 0) / a direct dense solve (stage != 0) give the same solution.
    if stage == 0:
        A = xtx.reshape(N * K2, K2)
        b = xty.reshape(N * K2, 1)
        Q, R = jnp.linalg.qr(A)                                        # cond(A), not cond(A)^2
        z = solve_triangular(R, Q.T @ b, lower=False)
        return jnp.broadcast_to(z.reshape(1, 1, 1, D, D), (N, 1, 1, D, D))
    z = jnp.linalg.solve(xtx, xty)                                     # batched square solve
    return z.reshape(N, 1, 1, D, D)


# ----------------------------------------------------------------------------
# Forward: Pallas path and pure-XLA reference path
# ----------------------------------------------------------------------------
def solvels_forward(x, d, y, alpha, sf=1, stage=0):
    N = x.shape[0]
    XaT, alpha_b, d_flat, K2, D = _build_system_inputs(x, d, y, alpha, sf)

    Ka = K2 + 1
    KP = max(8, _cdiv(Ka, 8) * 8)          # tap axis padded to a sublane multiple only (stays 32)
    M = XaT.shape[-1]
    n_split = 2 if N == 1 else 1           # v7x: shard the M reduction across both TCs when N==1
    tm, M_pad, _ = _pick_tiling(M, KP, n_split)

    # bf16 MXU operands; zero-padded extra taps / columns contribute nothing to the Gram matrix
    xa_bf = jnp.pad(XaT, ((0, 0), (0, KP - Ka), (0, M_pad - M)))

    G = gram_pallas(xa_bf, KP, tm, n_split).sum(axis=0)                # (N, KP, KP) f32
    return _regularize_and_solve(G, alpha_b, d_flat, stage, N, D)


def solvels_forward_ref(x, d, y, alpha, sf=1, stage=0):
    """Pure-XLA reference with the same bf16 operand precision / f32 accumulation as the MXU path."""
    N = x.shape[0]
    XaT, alpha_b, d_flat, K2, D = _build_system_inputs(x, d, y, alpha, sf)
    G = jnp.einsum('nkm,nlm->nkl', XaT, XaT, preferred_element_type=jnp.float32)
    return _regularize_and_solve(G, alpha_b, d_flat, stage, N, D)


if __name__ == "__main__":
    # Small shapes consistent with the module: a single blur kernel (C_out = C_in = 1),
    # D = 5 kernel, 24x24 images, batch 2.
    N, C_out, C_in = 2, 1, 1
    H = W = 24
    D = 5

    key = jax.random.PRNGKey(0)
    kx, ky, kd, ka = jax.random.split(key, 4)
    x = jax.random.normal(kx, (N, C_out, 1, H, W), jnp.float32)
    y = jax.random.normal(ky, (N, C_out, 1, H, W), jnp.float32)
    d0 = jax.random.normal(kd, (N, C_out, C_in, D, D), jnp.float32) * 0.1
    alpha = jax.random.uniform(ka, (N, 1, 1, 1), jnp.float32, 0.3, 1.0)

    fwd = jax.jit(solvels_forward, static_argnums=(4, 5))
    ref = jax.jit(solvels_forward_ref, static_argnums=(4, 5))

    # stage 0 (joint solve over the batch) and stage 1 (per-sample solve), sf = 1
    out0 = jax.block_until_ready(fwd(x, d0, y, alpha, 1, 0))
    out1 = jax.block_until_ready(fwd(x, d0, y, alpha, 1, 1))
    assert out0.shape == (N, 1, 1, D, D), out0.shape
    assert out1.shape == (N, 1, 1, D, D), out1.shape
    np.testing.assert_allclose(np.asarray(out0), np.asarray(ref(x, d0, y, alpha, 1, 0)),
                               rtol=2e-3, atol=5e-4)
    np.testing.assert_allclose(np.asarray(out1), np.asarray(ref(x, d0, y, alpha, 1, 1)),
                               rtol=2e-3, atol=5e-4)

    # strided-unfold path (sf = 2 changes the crop offsets and M)
    out2 = jax.block_until_ready(fwd(x, d0, y, alpha, 2, 1))
    assert out2.shape == (N, 1, 1, D, D), out2.shape
    np.testing.assert_allclose(np.asarray(out2), np.asarray(ref(x, d0, y, alpha, 2, 1)),
                               rtol=2e-3, atol=5e-4)

    # N == 1 exercises the 2-way M-reduction split (keeps both v7x TensorCores busy)
    out3 = jax.block_until_ready(fwd(x[:1], d0[:1], y[:1], alpha[:1], 1, 1))
    assert out3.shape == (1, 1, 1, D, D), out3.shape
    np.testing.assert_allclose(np.asarray(out3),
                               np.asarray(ref(x[:1], d0[:1], y[:1], alpha[:1], 1, 1)),
                               rtol=2e-3, atol=5e-4)

    print("KERNEL_OK")
</pallas_src>

<mosaic_0001>
module attributes {stable_mosaic.version = 11 : i64} {
  func.func @_gram_kernel(%arg0: i32, %arg1: i32, %arg2: i32, %arg3: memref<1x32x384xbf16, #tpu.memory_space<vmem>>, %arg4: memref<1x1x32x32xf32, #tpu.memory_space<vmem>>, %arg5: memref<32x32xf32, #tpu.memory_space<vmem>>) attributes {dimension_semantics = [#tpu.dimension_semantics<parallel>, #tpu.dimension_semantics<parallel>, #tpu.dimension_semantics<arbitrary>], iteration_bounds = array<i64: 1, 2, 1>, scalar_prefetch = 0 : i64, scratch_operands = 1 : i64, tpu.core_type = #tpu.core_type<tc>, window_params = [{transform_indices = @transform_0, window_bounds = array<i64: 1, 32, 384>}, {transform_indices = @transform_1, window_bounds = array<i64: 1, 1, 32, 32>}]} {
    %c0_i32 = arith.constant 0 : i32
    %0 = arith.cmpi eq, %arg2, %c0_i32 : i32
    %1 = arith.extui %0 : i1 to i32
    %c0_i32_0 = arith.constant 0 : i32
    %2 = arith.cmpi ne, %1, %c0_i32_0 : i32
    scf.if %2 {
      %cst_9 = arith.constant 0.000000e+00 : f32
      %12 = vector.broadcast %cst_9 : f32 to vector<32x32xf32>
      %c0_10 = arith.constant 0 : index
      %c0_11 = arith.constant 0 : index
      %13 = vector.load %arg5[%c0_10, %c0_11] : memref<32x32xf32, #tpu.memory_space<vmem>>, vector<32x32xf32>
      tpu.vector_store %arg5[%c0_10, %c0_11], %12 {strides = array<i32>} : memref<32x32xf32, #tpu.memory_space<vmem>>, vector<32x32xf32>,
    } else {
    }
    %c0 = arith.constant 0 : index
    %c0_1 = arith.constant 0 : index
    %c0_2 = arith.constant 0 : index
    %3 = vector.load %arg3[%c0, %c0_1, %c0_2] : memref<1x32x384xbf16, #tpu.memory_space<vmem>>, vector<1x32x384xbf16>
    %4 = vector.shape_cast %3 : vector<1x32x384xbf16> to vector<32x384xbf16>
    %c0_3 = arith.constant 0 : index
    %c0_4 = arith.constant 0 : index
    %5 = vector.load %arg5[%c0_3, %c0_4] : memref<32x32xf32, #tpu.memory_space<vmem>>, vector<32x32xf32>
    %cst = arith.constant dense<0.000000e+00> : vector<32x32xf32>
    %6 = tpu.matmul %4, %4, %cst {dimension_numbers = #tpu.dot_dimension_numbers<[1], [1], [0], [0], [0, 0, 1, 0], [], []>} : vector<32x384xbf16>, vector<32x384xbf16>, vector<32x32xf32> -> vector<32x32xf32>
    %7 = arith.addf %5, %6 : vector<32x32xf32>
    %c0_5 = arith.constant 0 : index
    %c0_6 = arith.constant 0 : index
    %8 = vector.load %arg5[%c0_5, %c0_6] : memref<32x32xf32, #tpu.memory_space<vmem>>, vector<32x32xf32>
    tpu.vector_store %arg5[%c0_5, %c0_6], %7 {strides = array<i32>} : memref<32x32xf32, #tpu.memory_space<vmem>>, vector<32x32xf32>,
    %c0_i32_7 = arith.constant 0 : i32
    %9 = arith.cmpi eq, %arg2, %c0_i32_7 : i32
    %10 = arith.extui %9 : i1 to i32
    %c0_i32_8 = arith.constant 0 : i32
    %11 = arith.cmpi ne, %10, %c0_i32_8 : i32
    scf.if %11 {
      %c0_9 = arith.constant 0 : index
      %c0_10 = arith.constant 0 : index
      %12 = vector.load %arg5[%c0_9, %c0_10] : memref<32x32xf32, #tpu.memory_space<vmem>>, vector<32x32xf32>
      %c0_11 = arith.constant 0 : index
      %c0_12 = arith.constant 0 : index
      %c0_13 = arith.constant 0 : index
      %c0_14 = arith.constant 0 : index
      %13 = vector.load %arg4[%c0_11, %c0_12, %c0_13, %c0_14] : memref<1x1x32x32xf32, #tpu.memory_space<vmem>>, vector<1x1x32x32xf32>
      %14 = vector.shape_cast %13 : vector<1x1x32x32xf32> to vector<32x32xf32>
      %15 = vector.shape_cast %12 : vector<32x32xf32> to vector<1x1x32x32xf32>
      tpu.vector_store %arg4[%c0_11, %c0_12, %c0_13, %c0_14], %15 {strides = array<i32>} : memref<1x1x32x32xf32, #tpu.memory_space<vmem>>, vector<1x1x32x32xf32>,
    } else {
    }
    return
  }
  func.func @transform_0(%arg0: i32, %arg1: i32, %arg2: i32) -> (i32, i32, i32) {
    %c1_i32 = arith.constant 1 : i32
    %0 = arith.muli %arg0, %c1_i32 : i32
    %1 = arith.addi %0, %arg2 : i32
    %c0_i32 = arith.constant 0 : i32
    %c0_i32_0 = arith.constant 0 : i32
    return %arg1, %c0_i32, %1 : i32, i32, i32
  }
  func.func @transform_1(%arg0: i32, %arg1: i32, %arg2: i32) -> (i32, i32, i32, i32) {
    %c0_i32 = arith.constant 0 : i32
    %c0_i32_0 = arith.constant 0 : i32
    %c0_i32_1 = arith.constant 0 : i32
    return %arg0, %arg1, %c0_i32, %c0_i32_0 : i32, i32, i32, i32
  }
}

</mosaic_0001>

<bundles_post_ra>
// kernel: custom-call.8
= control target key start
LH: loop header
LB: loop body
LE: loop exit
PB: predicated region body
PF: predicated region fallthrough
CT: control target
= control target key end

     0   :  { %v765_v6 = vmov 0.0   ;;  %s803_s23 = smov 0   ;;  %s1079_s0 = inlined_call_operand.vmem [shape: f32[50,25], index: 0, kind: input, shape index: {}]   ;;  %s1080_s1 = inlined_call_operand.vmem [shape: f32[50,25], index: 1, kind: output, shape index: {0}]   ;;  %s1081_s2 = inlined_call_operand.vmem [shape: f32[25], index: 2, kind: output, shape index: {1}]  }
   0x1   :  { %v43_v0 = vld [vmem:[%s1079_s0] sm:$0xff]  ;;  %v45_v1 = vld [vmem:[%s1079_s0 + $0x8] sm:$0xff]  ;;  %v47_v2 = vld [vmem:[%s1079_s0 + $0x10] sm:$0xff]  ;;  %86 = vst [vmem:[#allocation2] sm:$0x1] %v765_v6 }
   0x2   :  { %v49_v3 = vld [vmem:[%s1079_s0 + $0x18] sm:$0xff]  ;;  %v51_v4 = vld [vmem:[%s1079_s0 + $0x20] sm:$0xff]  ;;  %v53_v5 = vld [vmem:[%s1079_s0 + $0x28] sm:$0xff]  ;;  %61 = vst [vmem:[#allocation1] sm:$0xff] %v43_v0 }
   0x3   :  { %65 = vst [vmem:[#allocation1 + $0x8] sm:$0xff] %v45_v1  ;;  %69 = vst [vmem:[#allocation1 + $0x10] sm:$0xff] %v47_v2  ;;  %v55_v7 = vld [vmem:[%s1079_s0 + $0x30] sm:$0xff] }
   0x4   :  { %73 = vst [vmem:[#allocation1 + $0x18] sm:$0xff] %v49_v3  ;;  %77 = vst [vmem:[#allocation1 + $0x20] sm:$0xff] %v51_v4 }
   0x5   :  { %81 = vst [vmem:[#allocation1 + $0x28] sm:$0xff] %v53_v5  ;;  %85 = vst [vmem:[#allocation1 + $0x30] sm:$0xff] %v55_v7 }
   0x6 LB: > { %v94_v8 = vlaneseq  ;;  %v812_v11 = vstv %s763_s23  ;;  %s181_s0 = scalar_lea.vmem [#allocation1], %s763_s23  ;;  %s851_s24 = smov [#allocation1]  ;;  %s763_s23 = sphi %s803_s23, %s92_s23  }
   0x7   : > { %s347_s25 = scalar_lea.vmem [#allocation4], %s763_s23  ;;  %s921_s26 = smov [#allocation1] }
   0x8   : > { %v809_v10 = vshrl.u32 %v94_v8, 7  ;;  %s923_s27 = smov [#allocation4] }
   0x9   : > { %v93_v9 = vld [vmem:[#allocation1] sm:$0xff] }
   0xa   : > { %vm98_vm0 = vcmp.gt.s32.totalorder %v809_v10, %v812_v11  ;;  %v102_v12 = vld [vmem:[#allocation1 + $0x8] sm:$0xff]  ;;  %v105_v13 = vadd.s32 8, %v809_v10  ;;  %v112_v14 = vld [vmem:[#allocation1 + $0x10] sm:$0xff]  ;;  %v115_v15 = vadd.s32 16, %v809_v10  ;;  %v125_v17 = vadd.s32 24, %v809_v10 }
   0xb   : > { %v122_v16 = vld [vmem:[#allocation1 + $0x18] sm:$0xff]  ;;  %v99_v18 = vsel %vm98_vm0, %v93_v9, 0.0  ;;  %v135_v19 = vadd.s32 32, %v809_v10  ;;  %v145_v20 = vadd.s32 40, %v809_v10  ;;  %v155_v21 = vadd.s32 48, %v809_v10  ;;  %v132_v23 = vld [vmem:[#allocation1 + $0x20] sm:$0xff] }
   0xc   : > { %v100_v22 = vmul.f32 %v99_v18, %v99_v18  ;;  %vm107_vm1 = vcmp.gt.s32.totalorder %v105_v13, %v812_v11  ;;  %vm117_vm2 = vcmp.gt.s32.totalorder %v115_v15, %v812_v11  ;;  %vm127_vm3 = vcmp.gt.s32.totalorder %v125_v17, %v812_v11  ;;  %v142_v29 = vld [vmem:[#allocation1 + $0x28] sm:$0xff]  ;;  %v152_v33 = vld [vmem:[#allocation1 + $0x30] sm:$0xff]  ;;  %v832_v50 = vld [vmem:[%s181_s0] ss:$0 sm:$0xff] }
   0xd   : > { %v108_v24 = vsel %vm107_vm1, %v102_v12, 0.0  ;;  %v118_v25 = vsel %vm117_vm2, %v112_v14, 0.0  ;;  %v128_v26 = vsel %vm127_vm3, %v122_v16, 0.0  ;;  %vm137_vm4 = vcmp.gt.s32.totalorder %v135_v19, %v812_v11 }
   0xe   : > { %v109_v27 = vmul.f32 %v108_v24, %v108_v24  ;;  %v119_v28 = vmul.f32 %v118_v25, %v118_v25  ;;  %v138_v30 = vsel %vm137_vm4, %v132_v23, 0.0  ;;  %vm147_vm5 = vcmp.gt.s32.totalorder %v145_v20, %v812_v11  ;;  %v221_v24 = vld [vmem:[%s851_s24] sm:$0xff]  ;;  %v702_v25 = vld [vmem:[%s851_s24 + $0x10] sm:$0xff] }
   0xf   : > { %vm157_vm6 = vcmp.gt.s32.totalorder %v155_v21, %v812_v11  ;;  %vm158_vm7 = vcmp.lt.s32.totalorder %v155_v21, 50  ;;  %v129_v32 = vmul.f32 %v128_v26, %v128_v26  ;;  %v148_v34 = vsel %vm147_vm5, %v142_v29, 0.0 }
  0x10   : > { %v110_v31 = vadd.f32 %v109_v27, %v100_v22  ;;  %vm159_vm8 = vmand %vm157_vm6, %vm158_vm7  ;;  %v139_v36 = vmul.f32 %v138_v30, %v138_v30  ;;  %v149_v39 = vmul.f32 %v148_v34, %v148_v34  ;;  %v183_v51 = vand.u32 2147483647, %v832_v50  ;;  %v701_v27 = vld [vmem:[%s851_s24 + $0x8] sm:$0xff]  ;;  %v704_v30 = vld [vmem:[%s851_s24 + $0x20] sm:$0xff] }
  0x11   : > { %v160_v37 = vsel %vm159_vm8, %v152_v33, 0.0  ;;  %vm208_vm14 = vcmp.lt.f32.partialorder %v832_v50, 0.0  ;;  %v220_v10 = vmov %v809_v10  ;;  %v862_v29 = vand.u32 127, %v94_v8 }
  0x12   : > { %v120_v35 = vadd.f32 %v119_v28, %v110_v31  ;;  %v161_v41 = vmul.f32 %v160_v37, %v160_v37  ;;  %v184_v56 = vmax.f32 %v183_v51, 0.0  ;;  %v257_v19 = vadd.s32 16, %v220_v10  ;;  %v703_v28 = vld [vmem:[%s851_s24 + $0x18] sm:$0xff]  ;;  %v705_v31 = vld [vmem:[%s851_s24 + $0x28] sm:$0xff] }
  0x13   : > { %v239_v20 = vadd.s32 8, %v220_v10  ;;  %v275_v21 = vadd.s32 24, %v220_v10  ;;  %v293_v22 = vadd.s32 32, %v220_v10  ;;  %v311_v23 = vadd.s32 40, %v220_v10 }
  0x14   : > { %v130_v38 = vadd.f32 %v129_v32, %v120_v35  ;;  %vm224_vm15 = vcmp.gt.s32.totalorder %v220_v10, %v812_v11  ;;  %vm259_vm0 = vcmp.gt.s32.totalorder %v257_v19, %v812_v11  ;;  %v329_v26 = vadd.s32 48, %v220_v10  ;;  %v370_v19 = vld [vmem:[%s921_s26] sm:$0xff] }
  0x15   : > { %vm241_vm1 = vcmp.gt.s32.totalorder %v239_v20, %v812_v11  ;;  %vm277_vm2 = vcmp.gt.s32.totalorder %v275_v21, %v812_v11  ;;  %vm295_vm3 = vcmp.gt.s32.totalorder %v293_v22, %v812_v11  ;;  %vm313_vm4 = vcmp.gt.s32.totalorder %v311_v23, %v812_v11  ;;  %v708_v20 = vld [vmem:[%s921_s26 + $0x8] sm:$0xff]  ;;  %v710_v21 = vld [vmem:[%s921_s26 + $0x10] sm:$0xff] }
  0x16   : > { %v140_v40 = vadd.f32 %v139_v36, %v130_v38  ;;  %v225_v32 = vsel %vm224_vm15, %v221_v24, 0.0  ;;  %v260_v33 = vsel %vm259_vm0, %v702_v25, 0.0  ;;  %v242_v34 = vsel %vm241_vm1, %v701_v27, 0.0 }
  0x17   : > { %v278_v35 = vsel %vm277_vm2, %v703_v28, 0.0  ;;  %vm331_vm5 = vcmp.gt.s32.totalorder %v329_v26, %v812_v11  ;;  %vm332_vm6 = vcmp.lt.s32.totalorder %v329_v26, 50  ;;  %v296_v36 = vsel %vm295_vm3, %v704_v30, 0.0  ;;  %v712_v28 = vld [vmem:[%s921_s26 + $0x18] sm:$0xff] }
  0x18   : > { %v150_v42 = vadd.f32 %v149_v39, %v140_v40  ;;  %v314_v37 = vsel %vm313_vm4, %v705_v31, 0.0  ;;  %vm871_vm7 = vcmp.eq.s32.totalorder %v862_v29, %v812_v11  ;;  %vm876_vm8 = vmand %vm331_vm5, %vm332_vm6  ;;  %v367_v10 = vmov %v809_v10 }
  0x19   : > { %vm977_vm1 = vcmp.gt.s32.totalorder %v862_v29, %v812_v11 }
  0x1a   : > { %v162_v43 = vadd.f32 %v161_v41, %v150_v42 }
  0x1c   : > { %v163_v44 = vrot.slane %v162_v43, 4 }
  0x1e   : > { %v164_v45 = vadd.f32 %v163_v44, %v162_v43  ;;  %v706_v43 = vld [vmem:[%s851_s24 + $0x30] sm:$0xff] }
  0x20   : > { %v165_v46 = vrot.slane %v164_v45, 2 }
  0x22   : > { %v166_v47 = vadd.f32 %v165_v46, %v164_v45 }
  0x24   : > { %v167_v48 = vrot.slane %v166_v47, 1 }
  0x26   : > { %v828_v49 = vadd.f32 %v167_v48, %v166_v47 }
  0x28   : > { %747 = vrsqrt.f32 %v828_v49  ;;  %vm171_vm9 = vcmp.eq.f32.partialorder %v828_v49, inf  ;;  %v174_v53 = vand.u32 2147483648, %v828_v49  ;;  %vm173_vm10 = vcmp.eq.f32.partialorder %v828_v49, 0.0 }
  0x32   : > { %v748_v52 = vpop.eup %747 }
  0x33   : > { %v170_v54 = vmul.f32 %v748_v52, %v828_v49 }
  0x35   : > { %v172_v55 = vsel %vm171_vm9, %v828_v49, %v170_v54 }
  0x36   : > { %v175_v57 = vsel %vm173_vm10, %v174_v53, %v172_v55 }
  0x37   : > { %v185_v58 = vand.u32 2147483647, %v175_v57 }
  0x39   : > { %v186_v59 = vmax.f32 %v184_v56, %v185_v58 }
  0x3b   : > { %749 = vrcp.f32 %v186_v59  ;;  %vm198_vm13 = vcmp.eq.f32.partialorder %v186_v59, 0.0 }
  0x45   : > { %v750_v60 = vpop.eup %749 }
  0x46   : > { %v188_v61 = vmul.f32 %v750_v60, %v183_v51  ;;  %v191_v62 = vmul.f32 0.0, %v750_v60  ;;  %v195_v63 = vmul.f32 %v750_v60, %v185_v58 }
  0x48   : > { %v189_v0 = vmul.f32 %v188_v61, %v188_v61  ;;  %v192_v1 = vmul.f32 %v191_v62, %v191_v62  ;;  %v196_v2 = vmul.f32 %v195_v63, %v195_v63 }
  0x4a   : > { %v193_v3 = vadd.f32 %v192_v1, %v189_v0 }
  0x4c   : > { %v197_v4 = vadd.f32 %v196_v2, %v193_v3 }
  0x4e   : > { %751 = vrsqrt.f32 %v197_v4  ;;  %vm201_vm11 = vcmp.eq.f32.partialorder %v197_v4, inf  ;;  %v204_v6 = vand.u32 2147483648, %v197_v4  ;;  %vm203_vm12 = vcmp.eq.f32.partialorder %v197_v4, 0.0 }
  0x58   : > { %v752_v5 = vpop.eup %751 }
  0x59   : > { %v200_v7 = vmul.f32 %v752_v5, %v197_v4 }
  0x5b   : > { %v202_v9 = vsel %vm201_vm11, %v197_v4, %v200_v7 }
  0x5c   : > { %v205_v12 = vsel %vm203_vm12, %v204_v6, %v202_v9 }
  0x5d   : > { %v206_v13 = vmul.f32 %v205_v12, %v186_v59 }
  0x5f   : > { %v207_v14 = vsel %vm198_vm13, 0.0, %v206_v13  ;;  %v360_v13 = vld [vmem:[#allocation2] ss:$0 sm:$0xff] }
  0x60   : > { %v209_v15 = vxor.u32 2147483648, %v207_v14 }
  0x62   : > { %v210_v16 = vsel %vm208_vm14, %v207_v14, %v209_v15 }
  0x63   : > { %v846_v17 = vsel %vm173_vm10, %v832_v50, %v210_v16  ;;  %v211_v47 = vsub.f32 %v210_v16, %v832_v50 }
  0x64   : > { %v216_v18 = vsub.f32 %v832_v50, %v846_v17  ;;  %v334_v50 = vsel %vm876_vm8, %v706_v43, 0.0 }
  0x66   : > { %753 = vrcp.f32 %v216_v18  ;;  %v766_v18 = vmov 1.0  }
  0x67   : > { %755 = vrcp.f32 %v210_v16 }
  0x70   : > { %v754_v38 = vpop.eup %753 }
  0x71   : > { %v227_v39 = vmul.f32 %v754_v38, %v225_v32  ;;  %v262_v40 = vmul.f32 %v754_v38, %v260_v33  ;;  %v244_v41 = vmul.f32 %v754_v38, %v242_v34  ;;  %v280_v42 = vmul.f32 %v754_v38, %v278_v35  ;;  %v756_v54 = vpop.eup %755  ;;  %v714_v33 = vld [vmem:[%s921_s26 + $0x20] sm:$0xff] }
  0x72   : > { %v298_v45 = vmul.f32 %v754_v38, %v296_v36  ;;  %v316_v46 = vmul.f32 %v754_v38, %v314_v37  ;;  %v336_v61 = vmul.f32 %v754_v38, %v334_v50  ;;  %v213_v62 = vmul.f32 %v756_v54, %v211_v47  ;;  %v718_v38 = vld [vmem:[%s921_s26 + $0x30] sm:$0xff] }
  0x73   : > { %v228_v48 = vsel %vm173_vm10, 0.0, %v227_v39  ;;  %v263_v51 = vsel %vm173_vm10, 0.0, %v262_v40  ;;  %v245_v52 = vsel %vm173_vm10, 0.0, %v244_v41  ;;  %v281_v53 = vsel %vm173_vm10, 0.0, %v280_v42  ;;  %v716_v40 = vld [vmem:[%s921_s26 + $0x28] sm:$0xff]  ;;  %s943_s26 = smov %s921_s26 }
  0x74   : > { %v233_v55 = vsel %vm871_vm7, %v228_v48, 0.0  ;;  %v268_v56 = vsel %vm871_vm7, %v263_v51, 0.0  ;;  %v250_v57 = vsel %vm871_vm7, %v245_v52, 0.0  ;;  %v286_v58 = vsel %vm871_vm7, %v281_v53, 0.0  ;;  %s573_s28 = scalar_lea.vmem %s943_s26, %s763_s23  ;;  %s92_s23 = sadd.s32 1, %s763_s23  }
  0x75   : > { %234 = vadd.xlane.f32.xlu0 %v233_v55  ;;  %269 = vadd.xlane.f32.xlu1 %v268_v56  ;;  %v299_v59 = vsel %vm173_vm10, 0.0, %v298_v45  ;;  %v317_v60 = vsel %vm173_vm10, 0.0, %v316_v46  ;;  %v337_v1 = vsel %vm173_vm10, 0.0, %v336_v61  ;;  %v215_v2 = vsel %vm173_vm10, 0.0, %v213_v62  ;;  %v433_v62 = vld [vmem:[%s943_s26] sm:$0xff]  ;;  %p89_p0 = scmp.ge.s32.totalorder %s92_s23, 25  }
  0x76   : > { %v304_v63 = vsel %vm871_vm7, %v299_v59, 0.0  ;;  %v322_v0 = vsel %vm871_vm7, %v317_v60, 0.0  ;;  %v342_v3 = vsel %vm871_vm7, %v337_v1, 0.0  ;;  %v353_v4 = vsel %vm871_vm7, %v215_v2, 0.0  ;;  %v723_v1 = vld [vmem:[%s943_s26 + $0x10] sm:$0xff]  ;;  %v726_v2 = vld [vmem:[%s943_s26 + $0x18] sm:$0xff] }
  0x77   : > { %v407_v36 = vadd.s32 48, %v367_v10  ;;  %v426_v10 = vmov %v809_v10 }
  0x78   : > { %v447_v54 = vadd.s32 8, %v426_v10  ;;  %v468_v55 = vadd.s32 16, %v426_v10  ;;  %vm443_vm10 = vcmp.ge.s32.totalorder %v426_v10, %v812_v11  ;;  %v531_v59 = vadd.s32 40, %v426_v10 }
  0x79   : > { %251 = vadd.xlane.f32.xlu0 %v250_v57  ;;  %287 = vadd.xlane.f32.xlu1 %v286_v58  ;;  %vm413_vm9 = vcmp.lt.s32.totalorder %v407_v36, 50  ;;  %v489_v57 = vadd.s32 24, %v426_v10  ;;  %v510_v58 = vadd.s32 32, %v426_v10  ;;  %vm950_vm13 = vmand %vm871_vm7, %vm443_vm10 }
  0x7a   : > { %vm464_vm11 = vcmp.ge.s32.totalorder %v447_v54, %v812_v11  ;;  %vm485_vm12 = vcmp.ge.s32.totalorder %v468_v55, %v812_v11  ;;  %vm548_vm3 = vcmp.ge.s32.totalorder %v531_v59, %v812_v11 }
  0x7b   : > { %vm958_vm14 = vmand %vm871_vm7, %vm464_vm11  ;;  %vm506_vm0 = vcmp.ge.s32.totalorder %v489_v57, %v812_v11  ;;  %vm527_vm2 = vcmp.ge.s32.totalorder %v510_v58, %v812_v11 }
  0x7c   : > { %vm966_vm15 = vmand %vm871_vm7, %vm485_vm12 }
  0x7d   : > { %305 = vadd.xlane.f32.xlu0 %v304_v63  ;;  %323 = vadd.xlane.f32.xlu1 %v322_v0  ;;  %v720_v63 = vld [vmem:[%s943_s26 + $0x8] sm:$0xff]  ;;  %vm987_vm4 = vmand %vm871_vm7, %vm506_vm0 }
  0x7e   : > { %vm994_vm6 = vmand %vm871_vm7, %vm527_vm2 }
  0x7f   : > { %vm1002_vm8 = vmand %vm871_vm7, %vm548_vm3 }
  0x81   : > { %343 = vadd.xlane.f32.xlu0 %v342_v3  ;;  %354 = vadd.xlane.f32.xlu1 %v353_v4  ;;  %v552_v3 = vadd.s32 48, %v426_v10 }
  0x83   : > { %vm569_vm5 = vcmp.ge.s32.totalorder %v552_v3, %v812_v11 }
 0x102   : > { %v235_v5 = vpop.xlane.xlu0 %234  ;;  %v270_v6 = vpop.xlane.xlu1 %269 }
 0x103   : > { %236 = vst [vmem:[#allocation4] sm:$0xff] %v235_v5  ;;  %272 = vst [vmem:[#allocation4 + $0x10] sm:$0xff] %v270_v6  ;;  %v729_v6 = vld [vmem:[%s943_s26 + $0x20] sm:$0xff] }
 0x106   : > { %v252_v7 = vpop.xlane.xlu0 %251  ;;  %v288_v9 = vpop.xlane.xlu1 %287 }
 0x107   : > { %254 = vst [vmem:[#allocation4 + $0x8] sm:$0xff] %v252_v7  ;;  %290 = vst [vmem:[#allocation4 + $0x18] sm:$0xff] %v288_v9  ;;  %v732_v7 = vld [vmem:[%s943_s26 + $0x28] sm:$0xff]  ;;  %v735_v9 = vld [vmem:[%s943_s26 + $0x30] sm:$0xff] }
 0x10a   : > { %v306_v49 = vpop.xlane.xlu0 %305  ;;  %v324_v12 = vpop.xlane.xlu1 %323 }
 0x10b   : > { %308 = vst [vmem:[#allocation4 + $0x20] sm:$0xff] %v306_v49  ;;  %326 = vst [vmem:[#allocation4 + $0x28] sm:$0xff] %v324_v12 }
 0x10e   : > { %v344_v14 = vpop.xlane.xlu0 %343  ;;  %v915_v15 = vpop.xlane.xlu1 %354 }
 0x10f   : > { %346 = vst [vmem:[#allocation4 + $0x30] sm:$0xff] %v344_v14  ;;  %v361_v16 = vsel %vm871_vm7, %v915_v15, %v360_v13 }
 0x110   : > { %348 = vst [vmem:[%s347_s25] sm:$0x1] %v766_v18  ;;  %362 = vst [vmem:[#allocation2] sm:$0x1] %v361_v16 }
 0x117   : > { %v369_v22 = vld [vmem:[%s923_s27] sm:$0xff]  ;;  %v707_v23 = vld [vmem:[%s923_s27 + $0x8] sm:$0xff]  ;;  %v709_v24 = vld [vmem:[%s923_s27 + $0x10] sm:$0xff] }
 0x118   : > { %v371_v25 = vmul.f32 %v370_v19, %v369_v22  ;;  %v377_v26 = vmul.f32 %v708_v20, %v707_v23  ;;  %v711_v27 = vld [vmem:[%s923_s27 + $0x18] sm:$0xff]  ;;  %v384_v31 = vmul.f32 %v710_v21, %v709_v24  ;;  %v713_v32 = vld [vmem:[%s923_s27 + $0x20] sm:$0xff]  ;;  %v717_v37 = vld [vmem:[%s923_s27 + $0x30] sm:$0xff] }
 0x119   : > { %v391_v35 = vmul.f32 %v712_v28, %v711_v27  ;;  %v715_v39 = vld [vmem:[%s923_s27 + $0x28] sm:$0xff]  ;;  %v398_v42 = vmul.f32 %v714_v33, %v713_v32  ;;  %v412_v43 = vmul.f32 %v718_v38, %v717_v37  ;;  %s423_s27 = smov %s923_s27  ;;  %v584_v54 = vld [vmem:[#allocation2] sm:$0x1] (%p89_p0) }
 0x11a   : > { %v378_v30 = vadd.f32 %v377_v26, %v371_v25  ;;  %v405_v45 = vmul.f32 %v716_v40, %v715_v39  ;;  %v431_v4 = vld [vmem:[%s423_s27] sm:$0xff]  ;;  %v719_v10 = vld [vmem:[%s423_s27 + $0x8] sm:$0xff]  ;;  %v722_v13 = vld [vmem:[%s423_s27 + $0x10] sm:$0xff]  ;;  %586 = vst [vmem:[#allocation3] sm:$0x1] (%p89_p0), %v584_v54 }
 0x11b   : > { %v414_v47 = vsel %vm413_vm9, %v412_v43, 0.0  ;;  %v725_v14 = vld [vmem:[%s423_s27 + $0x18] sm:$0xff]  ;;  %v728_v16 = vld [vmem:[%s423_s27 + $0x20] sm:$0xff]  ;;  %v731_v18 = vld [vmem:[%s423_s27 + $0x28] sm:$0xff] }
 0x11c   : > { %v385_v34 = vadd.f32 %v384_v31, %v378_v30  ;;  %v734_v19 = vld [vmem:[%s423_s27 + $0x30] sm:$0xff]  ;;  %vm1008_vm9 = vmand %vm871_vm7, %vm569_vm5 }
 0x11e   : > { %v392_v41 = vadd.f32 %v391_v35, %v385_v34 }
 0x120   : > { %v399_v44 = vadd.f32 %v398_v42, %v392_v41 }
 0x121   :  { %v660_v59 = vld [vmem:[#allocation3] sm:$0x1] (%p89_p0) }
 0x122   : > { %v406_v46 = vadd.f32 %v405_v45, %v399_v44  ;;  %661 = vst [vmem:[%s1081_s2] sm:$0x1] (%p89_p0), %v660_v59 }
 0x124   : > { %v415_v48 = vadd.f32 %v414_v47, %v406_v46 }
 0x126   : > { %v416_v51 = vrot.slane %v415_v48, 4 }
 0x128   : > { %v417_v52 = vadd.f32 %v416_v51, %v415_v48 }
 0x12a   : > { %v418_v53 = vrot.slane %v417_v52, 2 }
 0x12c   : > { %v419_v56 = vadd.f32 %v418_v53, %v417_v52 }
 0x12e   : > { %v420_v50 = vrot.slane %v419_v56, 1 }
 0x130   : > { %v421_v60 = vadd.f32 %v420_v50, %v419_v56 }
 0x132   : > { %v427_v49 = vmul.f32 %v421_v60, %v915_v15 }
 0x134   : > { %v432_v20 = vmul.f32 %v431_v4, %v427_v49  ;;  %v452_v21 = vmul.f32 %v719_v10, %v427_v49  ;;  %v473_v22 = vmul.f32 %v722_v13, %v427_v49  ;;  %v494_v15 = vmul.f32 %v725_v14, %v427_v49 }
 0x135   : > { %v515_v23 = vmul.f32 %v728_v16, %v427_v49  ;;  %v536_v24 = vmul.f32 %v731_v18, %v427_v49  ;;  %v557_v25 = vmul.f32 %v734_v19, %v427_v49 }
 0x136   : > { %v436_v27 = vsub.f32 %v433_v62, %v432_v20  ;;  %v457_v28 = vsub.f32 %v720_v63, %v452_v21  ;;  %v478_v30 = vsub.f32 %v723_v1, %v473_v22  ;;  %v499_v31 = vsub.f32 %v726_v2, %v494_v15 }
 0x137   : > { %v520_v33 = vsub.f32 %v729_v6, %v515_v23  ;;  %v541_v34 = vsub.f32 %v732_v7, %v536_v24  ;;  %v562_v35 = vsub.f32 %v735_v9, %v557_v25 }
 0x138   : > { %v437_v11 = vsel %vm977_vm1, %v436_v27, %v433_v62  ;;  %v458_v37 = vsel %vm977_vm1, %v457_v28, %v720_v63  ;;  %v479_v38 = vsel %vm977_vm1, %v478_v30, %v723_v1  ;;  %v500_v39 = vsel %vm977_vm1, %v499_v31, %v726_v2 }
 0x139   : > { %v445_v40 = vsel %vm950_vm13, %v431_v4, %v437_v11  ;;  %v466_v41 = vsel %vm958_vm14, %v719_v10, %v458_v37  ;;  %v487_v42 = vsel %vm966_vm15, %v722_v13, %v479_v38  ;;  %v508_v43 = vsel %vm987_vm4, %v725_v14, %v500_v39 }
 0x13a   : > { %446 = vst [vmem:[%s943_s26] sm:$0xff] %v445_v40  ;;  %721 = vst [vmem:[%s943_s26 + $0x8] sm:$0xff] %v466_v41  ;;  %v521_v44 = vsel %vm977_vm1, %v520_v33, %v729_v6  ;;  %v542_v45 = vsel %vm977_vm1, %v541_v34, %v732_v7  ;;  %v563_v46 = vsel %vm977_vm1, %v562_v35, %v735_v9 }
 0x13b   : > { %724 = vst [vmem:[%s943_s26 + $0x10] sm:$0xff] %v487_v42  ;;  %727 = vst [vmem:[%s943_s26 + $0x18] sm:$0xff] %v508_v43  ;;  %v529_v47 = vsel %vm994_vm6, %v728_v16, %v521_v44  ;;  %v550_v48 = vsel %vm1002_vm8, %v731_v18, %v542_v45  ;;  %v571_v51 = vsel %vm1008_vm9, %v734_v19, %v563_v46 }
 0x13c   : > { %730 = vst [vmem:[%s943_s26 + $0x20] sm:$0xff] %v529_v47  ;;  %733 = vst [vmem:[%s943_s26 + $0x28] sm:$0xff] %v550_v48 }
 0x13d   : > { %736 = vst [vmem:[%s943_s26 + $0x30] sm:$0xff] %v571_v51 }
 0x140   :  { %91 = sbr.rel (!%p89_p0) target bundleno = 6 (0x6), region = 193 }
 0x144   : > { %v574_v52 = vld [vmem:[%s573_s28] ss:$0 sm:$0xff] }
 0x145   : > { %v579_v53 = vsel %vm871_vm7, %v846_v17, %v574_v52 }
 0x146   : > { %580 = vst [vmem:[%s573_s28] sm:$0x1] %v579_v53 }
 0x14d   :  { %v626_v55 = vld [vmem:[#allocation1] sm:$0xff]  ;;  %v628_v56 = vld [vmem:[#allocation1 + $0x8] sm:$0xff]  ;;  %v630_v17 = vld [vmem:[#allocation1 + $0x10] sm:$0xff] }
 0x14e   :  { %627 = vst [vmem:[%s1080_s1] sm:$0xff] %v626_v55  ;;  %629 = vst [vmem:[%s1080_s1 + $0x8] sm:$0xff] %v628_v56  ;;  %v632_v8 = vld [vmem:[#allocation1 + $0x18] sm:$0xff]  ;;  %v634_v50 = vld [vmem:[#allocation1 + $0x20] sm:$0xff] }
 0x14f   :  { %631 = vst [vmem:[%s1080_s1 + $0x10] sm:$0xff] %v630_v17  ;;  %633 = vst [vmem:[%s1080_s1 + $0x18] sm:$0xff] %v632_v8  ;;  %v636_v57 = vld [vmem:[#allocation1 + $0x28] sm:$0xff]  ;;  %v638_v58 = vld [vmem:[#allocation1 + $0x30] sm:$0xff] }
 0x150   :  { %635 = vst [vmem:[%s1080_s1 + $0x20] sm:$0xff] %v634_v50  ;;  %637 = vst [vmem:[%s1080_s1 + $0x28] sm:$0xff] %v636_v57 }
 0x151   :  { %639 = vst [vmem:[%s1080_s1 + $0x30] sm:$0xff] %v638_v58 }

// kernel: custom-call.10
= control target key start
LH: loop header
LB: loop body
LE: loop exit
PB: predicated region body
PF: predicated region fallthrough
CT: control target
= control target key end

     0   :  { %s869_s0 = inlined_call_operand.vmem [shape: f32[25,25], index: 0, kind: input, shape index: {}]   ;;  %s870_s1 = inlined_call_operand.vmem [shape: f32[25,25], index: 1, kind: output, shape index: {}]  }
   0x1   :  { %s15_s8 = scalar_lea.vmem %s869_s0, 24 }
   0x2   :  { %p558_p0 = scmp.gt.s32.totalorder %s869_s0, %s15_s8 }
   0x3   :  { %s760_s11 = smov (!%p558_p0), [#allocation0]   ;;  %s764_s14 = smov (!%p558_p0), %s869_s0  }
   0x4   :  { %559 = sbr.rel (%p558_p0) target bundleno = 21 (0x15), region = 101 }
   0xb LB: > { %v49_v0 = vld [vmem:[%s766_s14] sm:$0xff]  ;;  %s51_s14 = scalar_lea.vmem %s766_s14, 8   ;;  %s766_s14 = sphi %s764_s14, %s51_s14   ;;  %s762_s11 = sphi %s760_s11, %s52_s11  }
   0xc   : > { %50 = vst [vmem:[%s762_s11] sm:$0xff] %v49_v0  ;;  %s52_s11 = scalar_lea.vmem %s762_s11, 8   ;;  %p46_p1 = scmp.gt.s32.totalorder %s51_s14, %s15_s8 }
   0xe   :  { %48 = sbr.rel (!%p46_p1) target bundleno = 11 (0xb), region = 107 }
  0x15 PF:  { %v64_v1 = vlaneseq  ;;  %v98_v2 = vld [vmem:[#allocation0 + $0x1] ss:$0 sm:$0xff]  ;;  %vm99_vm0 = vcmask 203776   ;;  %v109_v10 = vld [vmem:[#allocation0 + $0x2] ss:$0 sm:$0xff]  ;;  %v776_v41 = vmov 0.0   ;;  %s768_s16 = smov %s870_s1  }
  0x16   :  { %v70_v5 = vld [vmem:[#allocation0] sm:$0xff]  ;;  %v100_v6 = vsel %vm99_vm0, %v98_v2, 0.0  ;;  %v111_v11 = vsel %vm99_vm0, %v109_v10, 0.0  ;;  %v175_v37 = vld [vmem:[#allocation0 + $0x8] ss:$0 sm:$0xff]  ;;  %s772_s17 = smov [#allocation1]  }
  0x17   :  { %v796_v3 = vand.u32 127, %v64_v1  ;;  %v798_v4 = vshrl.u32 %v64_v1, 7  ;;  %v120_v15 = vld [vmem:[#allocation0 + $0x3] ss:$0 sm:$0xff]  ;;  %v131_v20 = vld [vmem:[#allocation0 + $0x4] ss:$0 sm:$0xff] }
  0x18   :  { %v122_v16 = vsel %vm99_vm0, %v120_v15, 0.0  ;;  %v133_v21 = vsel %vm99_vm0, %v131_v20, 0.0  ;;  %v142_v25 = vld [vmem:[#allocation0 + $0x5] ss:$0 sm:$0xff]  ;;  %v153_v30 = vld [vmem:[#allocation0 + $0x6] ss:$0 sm:$0xff] }
  0x19   :  { %vm69_vm1 = vcmp.eq.s32.totalorder %v796_v3, %v798_v4  ;;  %vm73_vm2 = vcmp.eq.s32.totalorder %v796_v3, 0  ;;  %vm103_vm3 = vcmp.eq.s32.totalorder %v796_v3, 1  ;;  %vm114_vm4 = vcmp.eq.s32.totalorder %v796_v3, 2  ;;  %v164_v36 = vld [vmem:[#allocation0 + $0x7] ss:$0 sm:$0xff] }
  0x1a   :  { %v74_v7 = vsel %vm73_vm2, %v70_v5, 1.0  ;;  %vm125_vm5 = vcmp.eq.s32.totalorder %v796_v3, 3  ;;  %vm136_vm6 = vcmp.eq.s32.totalorder %v796_v3, 4  ;;  %v144_v26 = vsel %vm99_vm0, %v142_v25, 0.0  ;;  %v190_v47 = vld [vmem:[#allocation0 + $0x9] ss:$0 sm:$0xff] }
  0x1b   :  { %v75_v8 = vsel %vm69_vm1, %v74_v7, 0.0  ;;  %vm147_vm7 = vcmp.eq.s32.totalorder %v796_v3, 5  ;;  %v155_v31 = vsel %vm99_vm0, %v153_v30, 0.0  ;;  %v80_v35 = vadd.s32 8, %v798_v4  ;;  %v205_v55 = vld [vmem:[#allocation0 + $0xa] ss:$0 sm:$0xff] }
  0x1c   :  { %v104_v9 = vmul.f32 %v100_v6, %v75_v8  ;;  %vm158_vm8 = vcmp.eq.s32.totalorder %v796_v3, 6  ;;  %v166_v38 = vsel %vm99_vm0, %v164_v36, 0.0  ;;  %v177_v43 = vsel %vm99_vm0, %v175_v37, 0.0  ;;  %v220_v63 = vld [vmem:[#allocation0 + $0xb] ss:$0 sm:$0xff] }
  0x1d   :  { %vm81_vm9 = vcmp.eq.s32.totalorder %v796_v3, %v80_v35  ;;  %vm169_vm10 = vcmp.eq.s32.totalorder %v796_v3, 7  ;;  %vm180_vm11 = vcmp.eq.s32.totalorder %v796_v3, 8  ;;  %v192_v50 = vsel %vm99_vm0, %v190_v47, 0.0  ;;  %v265_v25 = vld [vmem:[#allocation0 + $0xe] ss:$0 sm:$0xff] }
  0x1e   :  { %105 = vadd.xlane.f32.xlu0 %v104_v9  ;;  %v82_v42 = vsel %vm81_vm9, 1.0, %v776_v41  ;;  %vm195_vm12 = vcmp.eq.s32.totalorder %v796_v3, 9  ;;  %v207_v58 = vsel %vm99_vm0, %v205_v55, 0.0  ;;  %vm210_vm13 = vcmp.eq.s32.totalorder %v796_v3, 10  ;;  %v235_v9 = vld [vmem:[#allocation0 + $0xc] ss:$0 sm:$0xff] }
  0x1f   :  { %v185_v45 = vmul.f32 %v177_v43, %v82_v42  ;;  %v222_v2 = vsel %vm99_vm0, %v220_v63, 0.0  ;;  %vm225_vm14 = vcmp.eq.s32.totalorder %v796_v3, 11  ;;  %vm240_vm15 = vcmp.eq.s32.totalorder %v796_v3, 12 }
  0x20   :  { %vm255_vm1 = vcmp.eq.s32.totalorder %v796_v3, 13  ;;  %vm270_vm2 = vcmp.eq.s32.totalorder %v796_v3, 14  ;;  %vm376_vm9 = vcmp.eq.s32.totalorder %v796_v3, 20 }
  0xab   :  { %v106_v12 = vpop.xlane.xlu0 %105 }
  0xac   :  { %v107_v13 = vsel %vm103_vm3, %v106_v12, %v75_v8  ;;  %v237_v12 = vsel %vm99_vm0, %v235_v9, 0.0  ;;  %vm285_vm3 = vcmp.eq.s32.totalorder %v796_v3, 15 }
  0xad   :  { %v115_v14 = vmul.f32 %v111_v11, %v107_v13 }
  0xaf   :  { %116 = vadd.xlane.f32.xlu0 %v115_v14 }
 0x13c   :  { %v117_v17 = vpop.xlane.xlu0 %116 }
 0x13d   :  { %v118_v18 = vsel %vm114_vm4, %v117_v17, %v107_v13  ;;  %v250_v17 = vld [vmem:[#allocation0 + $0xd] ss:$0 sm:$0xff] }
 0x13e   :  { %v126_v19 = vmul.f32 %v122_v16, %v118_v18  ;;  %v252_v20 = vsel %vm99_vm0, %v250_v17, 0.0 }
 0x140   :  { %127 = vadd.xlane.f32.xlu1 %v126_v19 }
 0x1cd   :  { %v128_v22 = vpop.xlane.xlu1 %127 }
 0x1ce   :  { %v129_v23 = vsel %vm125_vm5, %v128_v22, %v118_v18  ;;  %vm300_vm5 = vcmp.eq.s32.totalorder %v796_v3, 16 }
 0x1cf   :  { %v137_v24 = vmul.f32 %v133_v21, %v129_v23 }
 0x1d1   :  { %138 = vadd.xlane.f32.xlu1 %v137_v24 }
 0x25e   :  { %v139_v27 = vpop.xlane.xlu1 %138 }
 0x25f   :  { %v140_v28 = vsel %vm136_vm6, %v139_v27, %v129_v23  ;;  %vm319_vm6 = vcmp.eq.s32.totalorder %v796_v3, 17 }
 0x260   :  { %v148_v29 = vmul.f32 %v144_v26, %v140_v28 }
 0x262   :  { %149 = vadd.xlane.f32.xlu0 %v148_v29 }
 0x2ef   :  { %v150_v32 = vpop.xlane.xlu0 %149 }
 0x2f0   :  { %v151_v33 = vsel %vm147_vm7, %v150_v32, %v140_v28  ;;  %v267_v28 = vsel %vm99_vm0, %v265_v25, 0.0  ;;  %vm338_vm7 = vcmp.eq.s32.totalorder %v796_v3, 18 }
 0x2f1   :  { %v159_v34 = vmul.f32 %v155_v31, %v151_v33 }
 0x2f3   :  { %160 = vadd.xlane.f32.xlu1 %v159_v34 }
 0x380   :  { %v161_v39 = vpop.xlane.xlu1 %160 }
 0x381   :  { %v162_v40 = vsel %vm158_vm8, %v161_v39, %v151_v33  ;;  %v280_v33 = vld [vmem:[#allocation0 + $0xf] ss:$0 sm:$0xff]  ;;  %vm357_vm8 = vcmp.eq.s32.totalorder %v796_v3, 19 }
 0x382   :  { %v170_v44 = vmul.f32 %v166_v38, %v162_v40  ;;  %v282_v36 = vsel %vm99_vm0, %v280_v33, 0.0 }
 0x384   :  { %171 = vadd.xlane.f32.xlu0 %v170_v44 }
 0x388   :  { %186 = vadd.xlane.f32.xlu0 %v185_v45 }
 0x411   :  { %v172_v46 = vpop.xlane.xlu0 %171 }
 0x412   :  { %v173_v48 = vsel %vm169_vm10, %v172_v46, %v162_v40  ;;  %vm395_vm10 = vcmp.eq.s32.totalorder %v796_v3, 21 }
 0x413   :  { %v181_v49 = vmul.f32 %v177_v43, %v173_v48 }
 0x415   :  { %182 = vadd.xlane.f32.xlu1 %v181_v49  ;;  %v187_v51 = vpop.xlane.xlu0 %186  ;;  %v87_v49 = vadd.s32 16, %v798_v4 }
 0x416   :  { %v188_v52 = vsel %vm180_vm11, %v187_v51, %v82_v42  ;;  %v295_v42 = vld [vmem:[#allocation0 + $0x10] ss:$0 sm:$0xff] }
 0x417   :  { %v200_v53 = vmul.f32 %v192_v50, %v188_v52  ;;  %v297_v45 = vsel %vm99_vm0, %v295_v42, 0.0  ;;  %vm88_vm4 = vcmp.eq.s32.totalorder %v796_v3, %v87_v49 }
 0x419   :  { %201 = vadd.xlane.f32.xlu0 %v200_v53 }
 0x4a2   :  { %v183_v54 = vpop.xlane.xlu1 %182 }
 0x4a3   :  { %v184_v56 = vsel %vm180_vm11, %v183_v54, %v173_v48  ;;  %vm414_vm11 = vcmp.eq.s32.totalorder %v796_v3, 22 }
 0x4a4   :  { %v196_v57 = vmul.f32 %v192_v50, %v184_v56 }
 0x4a6   :  { %197 = vadd.xlane.f32.xlu1 %v196_v57  ;;  %v202_v59 = vpop.xlane.xlu0 %201 }
 0x4a7   :  { %v203_v60 = vsel %vm195_vm12, %v202_v59, %v188_v52  ;;  %v89_v52 = vsel %vm88_vm4, 1.0, %v776_v41 }
 0x4a8   :  { %v215_v61 = vmul.f32 %v207_v58, %v203_v60  ;;  %v309_v55 = vmul.f32 %v297_v45, %v89_v52 }
 0x4aa   :  { %216 = vadd.xlane.f32.xlu0 %v215_v61 }
 0x533   :  { %v198_v62 = vpop.xlane.xlu1 %197 }
 0x534   :  { %v199_v0 = vsel %vm195_vm12, %v198_v62, %v184_v56  ;;  %v314_v56 = vld [vmem:[#allocation0 + $0x11] ss:$0 sm:$0xff]  ;;  %vm433_vm12 = vcmp.eq.s32.totalorder %v796_v3, 23 }
 0x535   :  { %v211_v1 = vmul.f32 %v207_v58, %v199_v0  ;;  %v316_v58 = vsel %vm99_vm0, %v314_v56, 0.0 }
 0x537   :  { %212 = vadd.xlane.f32.xlu1 %v211_v1  ;;  %v217_v5 = vpop.xlane.xlu0 %216 }
 0x538   :  { %v218_v6 = vsel %vm210_vm13, %v217_v5, %v203_v60 }
 0x539   :  { %v230_v7 = vmul.f32 %v222_v2, %v218_v6 }
 0x53b   :  { %231 = vadd.xlane.f32.xlu0 %v230_v7 }
 0x5c4   :  { %v213_v8 = vpop.xlane.xlu1 %212 }
 0x5c5   :  { %v214_v10 = vsel %vm210_vm13, %v213_v8, %v199_v0  ;;  %v333_v0 = vld [vmem:[#allocation0 + $0x12] ss:$0 sm:$0xff] }
 0x5c6   :  { %v226_v11 = vmul.f32 %v222_v2, %v214_v10  ;;  %v335_v5 = vsel %vm99_vm0, %v333_v0, 0.0 }
 0x5c8   :  { %227 = vadd.xlane.f32.xlu1 %v226_v11  ;;  %v232_v13 = vpop.xlane.xlu0 %231 }
 0x5c9   :  { %v233_v14 = vsel %vm225_vm14, %v232_v13, %v218_v6  ;;  %v352_v13 = vld [vmem:[#allocation0 + $0x13] ss:$0 sm:$0xff] }
 0x5ca   :  { %v245_v15 = vmul.f32 %v237_v12, %v233_v14 }
 0x5cc   :  { %246 = vadd.xlane.f32.xlu0 %v245_v15 }
 0x655   :  { %v228_v16 = vpop.xlane.xlu1 %227 }
 0x656   :  { %v229_v18 = vsel %vm225_vm14, %v228_v16, %v214_v10  ;;  %v354_v16 = vsel %vm99_vm0, %v352_v13, 0.0 }
 0x657   :  { %v241_v19 = vmul.f32 %v237_v12, %v229_v18 }
 0x659   :  { %242 = vadd.xlane.f32.xlu1 %v241_v19  ;;  %v247_v21 = vpop.xlane.xlu0 %246 }
 0x65a   :  { %v248_v22 = vsel %vm240_vm15, %v247_v21, %v233_v14 }
 0x65b   :  { %v260_v23 = vmul.f32 %v252_v20, %v248_v22 }
 0x65d   :  { %261 = vadd.xlane.f32.xlu0 %v260_v23 }
 0x6e6   :  { %v243_v24 = vpop.xlane.xlu1 %242 }
 0x6e7   :  { %v244_v26 = vsel %vm240_vm15, %v243_v24, %v229_v18  ;;  %v371_v24 = vld [vmem:[#allocation0 + $0x14] ss:$0 sm:$0xff] }
 0x6e8   :  { %v256_v27 = vmul.f32 %v252_v20, %v244_v26 }
 0x6ea   :  { %257 = vadd.xlane.f32.xlu1 %v256_v27  ;;  %v262_v29 = vpop.xlane.xlu0 %261  ;;  %v373_v27 = vsel %vm99_vm0, %v371_v24, 0.0 }
 0x6eb   :  { %v263_v30 = vsel %vm255_vm1, %v262_v29, %v248_v22 }
 0x6ec   :  { %v275_v31 = vmul.f32 %v267_v28, %v263_v30 }
 0x6ee   :  { %276 = vadd.xlane.f32.xlu0 %v275_v31 }
 0x777   :  { %v258_v32 = vpop.xlane.xlu1 %257 }
 0x778   :  { %v259_v34 = vsel %vm255_vm1, %v258_v32, %v244_v26 }
 0x779   :  { %v271_v35 = vmul.f32 %v267_v28, %v259_v34 }
 0x77b   :  { %272 = vadd.xlane.f32.xlu1 %v271_v35  ;;  %v277_v37 = vpop.xlane.xlu0 %276  ;;  %v390_v35 = vld [vmem:[#allocation0 + $0x15] ss:$0 sm:$0xff] }
 0x77c   :  { %v278_v38 = vsel %vm270_vm2, %v277_v37, %v263_v30 }
 0x77d   :  { %v290_v39 = vmul.f32 %v282_v36, %v278_v38 }
 0x77f   :  { %291 = vadd.xlane.f32.xlu0 %v290_v39 }
 0x808   :  { %v273_v40 = vpop.xlane.xlu1 %272 }
 0x809   :  { %v274_v43 = vsel %vm270_vm2, %v273_v40, %v259_v34 }
 0x80a   :  { %v286_v44 = vmul.f32 %v282_v36, %v274_v43 }
 0x80c   :  { %287 = vadd.xlane.f32.xlu1 %v286_v44  ;;  %v292_v46 = vpop.xlane.xlu0 %291 }
 0x80d   :  { %v293_v47 = vsel %vm285_vm3, %v292_v46, %v278_v38  ;;  %v392_v38 = vsel %vm99_vm0, %v390_v35, 0.0 }
 0x80e   :  { %v305_v48 = vmul.f32 %v297_v45, %v293_v47 }
 0x810   :  { %306 = vadd.xlane.f32.xlu0 %v305_v48 }
 0x899   :  { %v288_v50 = vpop.xlane.xlu1 %287 }
 0x89a   :  { %v289_v51 = vsel %vm285_vm3, %v288_v50, %v274_v43 }
 0x89b   :  { %v301_v53 = vmul.f32 %v297_v45, %v289_v51 }
 0x89d   :  { %302 = vadd.xlane.f32.xlu1 %v301_v53  ;;  %v307_v54 = vpop.xlane.xlu0 %306 }
 0x89e   :  { %v308_v57 = vsel %vm300_vm5, %v307_v54, %v293_v47  ;;  %v409_v47 = vld [vmem:[#allocation0 + $0x16] ss:$0 sm:$0xff] }
 0x89f   :  { %v324_v59 = vmul.f32 %v316_v58, %v308_v57  ;;  %v411_v50 = vsel %vm99_vm0, %v409_v47, 0.0 }
 0x8a1   :  { %310 = vadd.xlane.f32.xlu1 %v309_v55 }
 0x8a5   :  { %325 = vadd.xlane.f32.xlu1 %v324_v59 }
 0x92a   :  { %v303_v60 = vpop.xlane.xlu1 %302 }
 0x92b   :  { %v304_v61 = vsel %vm300_vm5, %v303_v60, %v289_v51 }
 0x92c   :  { %v320_v62 = vmul.f32 %v316_v58, %v304_v61 }
 0x92e   :  { %v311_v63 = vpop.xlane.xlu1 %310  ;;  %321 = vadd.xlane.f32.xlu0 %v320_v62 }
 0x92f   :  { %v312_v1 = vsel %vm300_vm5, %v311_v63, %v89_v52 }
 0x930   :  { %v328_v2 = vmul.f32 %v316_v58, %v312_v1  ;;  %v428_v58 = vld [vmem:[#allocation0 + $0x17] ss:$0 sm:$0xff] }
 0x932   :  { %329 = vadd.xlane.f32.xlu0 %v328_v2  ;;  %v326_v6 = vpop.xlane.xlu1 %325 }
 0x933   :  { %v327_v7 = vsel %vm319_vm6, %v326_v6, %v308_v57 }
 0x934   :  { %v343_v8 = vmul.f32 %v335_v5, %v327_v7 }
 0x936   :  { %344 = vadd.xlane.f32.xlu0 %v343_v8 }
 0x9bb   :  { %v322_v9 = vpop.xlane.xlu0 %321 }
 0x9bc   :  { %v323_v10 = vsel %vm319_vm6, %v322_v9, %v304_v61  ;;  %v430_v61 = vsel %vm99_vm0, %v428_v58, 0.0 }
 0x9bd   :  { %v339_v11 = vmul.f32 %v335_v5, %v323_v10 }
 0x9bf   :  { %340 = vadd.xlane.f32.xlu1 %v339_v11  ;;  %v330_v12 = vpop.xlane.xlu0 %329 }
 0x9c0   :  { %v331_v14 = vsel %vm319_vm6, %v330_v12, %v312_v1 }
 0x9c1   :  { %v347_v15 = vmul.f32 %v335_v5, %v331_v14 }
 0x9c3   :  { %348 = vadd.xlane.f32.xlu1 %v347_v15  ;;  %v345_v17 = vpop.xlane.xlu0 %344 }
 0x9c4   :  { %v346_v18 = vsel %vm338_vm7, %v345_v17, %v327_v7  ;;  %v447_v7 = vld [vmem:[#allocation0 + $0x18] ss:$0 sm:$0xff] }
 0x9c5   :  { %v362_v19 = vmul.f32 %v354_v16, %v346_v18 }
 0x9c7   :  { %363 = vadd.xlane.f32.xlu1 %v362_v19 }
 0xa4c   :  { %v341_v20 = vpop.xlane.xlu1 %340 }
 0xa4d   :  { %v342_v21 = vsel %vm338_vm7, %v341_v20, %v323_v10  ;;  %v449_v10 = vsel %vm99_vm0, %v447_v7, 0.0  ;;  %vm452_vm0 = vcmp.eq.s32.totalorder %v796_v3, 24 }
 0xa4e   :  { %v358_v22 = vmul.f32 %v354_v16, %v342_v21 }
 0xa50   :  { %359 = vadd.xlane.f32.xlu0 %v358_v22  ;;  %v349_v23 = vpop.xlane.xlu1 %348 }
 0xa51   :  { %v350_v25 = vsel %vm338_vm7, %v349_v23, %v331_v14  ;;  %v94_v14 = vadd.s32 24, %v798_v4 }
 0xa52   :  { %v366_v26 = vmul.f32 %v354_v16, %v350_v25 }
 0xa53   :  { %vm95_vm13 = vcmp.eq.s32.totalorder %v796_v3, %v94_v14 }
 0xa54   :  { %367 = vadd.xlane.f32.xlu0 %v366_v26  ;;  %v364_v28 = vpop.xlane.xlu1 %363  ;;  %v96_v15 = vsel %vm95_vm13, 1.0, %v776_v41 }
 0xa55   :  { %v365_v29 = vsel %vm357_vm8, %v364_v28, %v346_v18  ;;  %v465_v16 = vmul.f32 %v449_v10, %v96_v15 }
 0xa56   :  { %v381_v30 = vmul.f32 %v373_v27, %v365_v29 }
 0xa58   :  { %382 = vadd.xlane.f32.xlu0 %v381_v30 }
 0xadd   :  { %v360_v31 = vpop.xlane.xlu0 %359 }
 0xade   :  { %v361_v32 = vsel %vm357_vm8, %v360_v31, %v342_v21 }
 0xadf   :  { %v377_v33 = vmul.f32 %v373_v27, %v361_v32 }
 0xae1   :  { %378 = vadd.xlane.f32.xlu1 %v377_v33  ;;  %v368_v34 = vpop.xlane.xlu0 %367 }
 0xae2   :  { %v369_v36 = vsel %vm357_vm8, %v368_v34, %v350_v25 }
 0xae3   :  { %v385_v37 = vmul.f32 %v373_v27, %v369_v36 }
 0xae5   :  { %386 = vadd.xlane.f32.xlu1 %v385_v37  ;;  %v383_v39 = vpop.xlane.xlu0 %382 }
 0xae6   :  { %v384_v40 = vsel %vm376_vm9, %v383_v39, %v365_v29 }
 0xae7   :  { %v400_v42 = vmul.f32 %v392_v38, %v384_v40 }
 0xae9   :  { %401 = vadd.xlane.f32.xlu1 %v400_v42 }
 0xb6e   :  { %v379_v43 = vpop.xlane.xlu1 %378 }
 0xb6f   :  { %v380_v44 = vsel %vm376_vm9, %v379_v43, %v361_v32 }
 0xb70   :  { %v396_v45 = vmul.f32 %v392_v38, %v380_v44 }
 0xb72   :  { %397 = vadd.xlane.f32.xlu0 %v396_v45  ;;  %v387_v46 = vpop.xlane.xlu1 %386 }
 0xb73   :  { %v388_v48 = vsel %vm376_vm9, %v387_v46, %v369_v36 }
 0xb74   :  { %v404_v49 = vmul.f32 %v392_v38, %v388_v48 }
 0xb76   :  { %405 = vadd.xlane.f32.xlu0 %v404_v49  ;;  %v402_v51 = vpop.xlane.xlu1 %401 }
 0xb77   :  { %v403_v52 = vsel %vm395_vm10, %v402_v51, %v384_v40 }
 0xb78   :  { %v419_v53 = vmul.f32 %v411_v50, %v403_v52 }
 0xb7a   :  { %420 = vadd.xlane.f32.xlu0 %v419_v53 }
 0xbff   :  { %v398_v54 = vpop.xlane.xlu0 %397 }
 0xc00   :  { %v399_v55 = vsel %vm395_vm10, %v398_v54, %v380_v44 }
 0xc01   :  { %v415_v56 = vmul.f32 %v411_v50, %v399_v55 }
 0xc03   :  { %416 = vadd.xlane.f32.xlu1 %v415_v56  ;;  %v406_v57 = vpop.xlane.xlu0 %405 }
 0xc04   :  { %v407_v59 = vsel %vm395_vm10, %v406_v57, %v388_v48 }
 0xc05   :  { %v423_v60 = vmul.f32 %v411_v50, %v407_v59 }
 0xc07   :  { %424 = vadd.xlane.f32.xlu1 %v423_v60  ;;  %v421_v62 = vpop.xlane.xlu0 %420 }
 0xc08   :  { %v422_v63 = vsel %vm414_vm11, %v421_v62, %v403_v52 }
 0xc09   :  { %v438_v0 = vmul.f32 %v430_v61, %v422_v63 }
 0xc0b   :  { %439 = vadd.xlane.f32.xlu1 %v438_v0 }
 0xc90   :  { %v417_v1 = vpop.xlane.xlu1 %416 }
 0xc91   :  { %v418_v2 = vsel %vm414_vm11, %v417_v1, %v399_v55 }
 0xc92   :  { %v434_v5 = vmul.f32 %v430_v61, %v418_v2 }
 0xc94   :  { %435 = vadd.xlane.f32.xlu0 %v434_v5  ;;  %v425_v6 = vpop.xlane.xlu1 %424 }
 0xc95   :  { %v426_v8 = vsel %vm414_vm11, %v425_v6, %v407_v59 }
 0xc96   :  { %v442_v9 = vmul.f32 %v430_v61, %v426_v8 }
 0xc98   :  { %443 = vadd.xlane.f32.xlu0 %v442_v9  ;;  %v440_v11 = vpop.xlane.xlu1 %439 }
 0xc99   :  { %v441_v12 = vsel %vm433_vm12, %v440_v11, %v422_v63 }
 0xc9a   :  { %v457_v13 = vmul.f32 %v449_v10, %v441_v12 }
 0xc9c   :  { %458 = vadd.xlane.f32.xlu0 %v457_v13 }
 0xca0   :  { %466 = vadd.xlane.f32.xlu0 %v465_v16 }
 0xd21   :  { %v436_v17 = vpop.xlane.xlu0 %435 }
 0xd22   :  { %v437_v18 = vsel %vm433_vm12, %v436_v17, %v418_v2 }
 0xd23   :  { %v453_v19 = vmul.f32 %v449_v10, %v437_v18 }
 0xd25   :  { %454 = vadd.xlane.f32.xlu1 %v453_v19  ;;  %v444_v20 = vpop.xlane.xlu0 %443 }
 0xd26   :  { %v445_v21 = vsel %vm433_vm12, %v444_v20, %v426_v8 }
 0xd27   :  { %v461_v22 = vmul.f32 %v449_v10, %v445_v21 }
 0xd29   :  { %462 = vadd.xlane.f32.xlu1 %v461_v22  ;;  %v459_v4 = vpop.xlane.xlu0 %458 }
 0xd2a   :  { %v460_v23 = vsel %vm452_vm0, %v459_v4, %v441_v12 }
 0xd2b   :  { %471 = vst [vmem:[#allocation1 + $0x8] sm:$0xff] %v460_v23 }
 0xd2d   :  { %v467_v41 = vpop.xlane.xlu0 %466 }
 0xd2e   :  { %v468_v24 = vsel %vm452_vm0, %v467_v41, %v96_v15 }
 0xd2f   :  { %475 = vst [vmem:[#allocation1 + $0x18] sm:$0xff] %v468_v24 }
 0xdb2   :  { %v455_v25 = vpop.xlane.xlu1 %454 }
 0xdb3   :  { %v456_v26 = vsel %vm452_vm0, %v455_v25, %v437_v18  }
 0xdb4   :  { %469 = vst [vmem:[#allocation1] sm:$0xff] %v456_v26 }
 0xdb6   :  { %v463_v27 = vpop.xlane.xlu1 %462 }
 0xdb7   :  { %v464_v28 = vsel %vm452_vm0, %v463_v27, %v445_v21 }
 0xdb8   :  { %473 = vst [vmem:[#allocation1 + $0x10] sm:$0xff] %v464_v28 }
 0xdb9 LB:  { %s774_s17 = sphi %s772_s17, %s525_s17   ;;  %s770_s16 = sphi %s768_s16, %s526_s16  }
 0xdbf   : > { %v523_v3 = vld [vmem:[%s774_s17] sm:$0xff]  ;;  %s525_s17 = scalar_lea.vmem %s774_s17, 8  }
 0xdc0   : > { %524 = vst [vmem:[%s770_s16] sm:$0xff] %v523_v3  ;;  %s526_s16 = scalar_lea.vmem %s770_s16, 8   ;;  %p520_p2 = scmp.gt.s32.totalorder %s525_s17, [#allocation1 + $0x18] }
 0xdc2   :  { %522 = sbr.rel (!%p520_p2) target bundleno = 3513 (0xdb9), region = 129 }

// kernel: custom-call.11
= control target key start
LH: loop header
LB: loop body
LE: loop exit
PB: predicated region body
PF: predicated region fallthrough
CT: control target
= control target key end

     0   :  { %v46_v0 = vlaneseq  ;;  %v659_v11 = vmov -1.0   ;;  %v660_v15 = vmov 0.0   ;;  %s787_s0 = inlined_call_operand.vmem [shape: f32[1,25,25], index: 0, kind: input, shape index: {}]   ;;  %s788_s1 = inlined_call_operand.vmem [shape: f32[1,25,25], index: 1, kind: output, shape index: {}]  }
   0x1   :  { %v39_v3 = vld [vmem:[%s787_s0 + $0x10] sm:$0xff] }
   0x2   :  { %v671_v1 = vand.u32 127, %v46_v0  ;;  %v673_v2 = vshrl.u32 %v46_v0, 7 }
   0x4   :  { %vm48_vm0 = vcmp.lt.s32.totalorder %v671_v1, 25  ;;  %v83_v4 = vadd.s32 16, %v673_v2  ;;  %v691_v10 = vadd.s32 24, %v673_v2  ;;  %vm140_vm4 = vcmp.eq.s32.totalorder %v671_v1, 24 }
   0x5   :  { %v141_v12 = vsel %vm140_vm4, 1.0, %v659_v11  ;;  %vm148_vm7 = vcmp.eq.s32.totalorder %v671_v1, 23  ;;  %vm162_vm8 = vcmp.eq.s32.totalorder %v671_v1, 22  ;;  %vm176_vm9 = vcmp.eq.s32.totalorder %v671_v1, 21 }
   0x6   :  { %vm84_vm1 = vcmp.eq.s32.totalorder %v83_v4, %v671_v1  ;;  %vm89_vm2 = vcmp.le.s32.totalorder %v83_v4, %v671_v1  ;;  %vm137_vm5 = vcmp.eq.s32.totalorder %v671_v1, %v691_v10  ;;  %vm130_vm6 = vcmp.eq.s32.totalorder %v671_v1, %v83_v4 }
   0x7   :  { %v86_v5 = vsel %vm84_vm1, %v39_v3, 0.0  ;;  %vm90_vm3 = vmand %vm89_vm2, %vm48_vm0  ;;  %v142_v13 = vsel %vm137_vm5, %v141_v12, 0.0  ;;  %v131_v16 = vsel %vm130_vm6, -1.0, %v660_v15  ;;  %vm190_vm10 = vcmp.eq.s32.totalorder %v671_v1, 20 }
   0x8   :  { %v91_v6 = vsel %vm90_vm3, %v39_v3, 0.0  ;;  %87 = vadd.xlane.f32.xlu0 %v86_v5  ;;  %vm204_vm11 = vcmp.eq.s32.totalorder %v671_v1, 19  ;;  %vm218_vm12 = vcmp.eq.s32.totalorder %v671_v1, 18  ;;  %v67_v61 = vadd.s32 8, %v673_v2 }
   0x9   :  { %vm232_vm14 = vcmp.eq.s32.totalorder %v671_v1, 17  ;;  %vm246_vm3 = vcmp.eq.s32.totalorder %v671_v1, 16  ;;  %vm260_vm4 = vcmp.eq.s32.totalorder %v671_v1, 15  ;;  %vm278_vm5 = vcmp.eq.s32.totalorder %v671_v1, 14 }
   0xa   :  { %vm68_vm13 = vcmp.eq.s32.totalorder %v67_v61, %v671_v1  ;;  %vm73_vm15 = vcmp.le.s32.totalorder %v67_v61, %v671_v1  ;;  %vm123_vm2 = vcmp.eq.s32.totalorder %v671_v1, %v67_v61  ;;  %vm296_vm6 = vcmp.eq.s32.totalorder %v671_v1, 13 }
   0xb   :  { %vm74_vm1 = vmand %vm73_vm15, %vm48_vm0  ;;  %vm386_vm15 = vcmp.eq.s32.totalorder %v671_v1, 8 }
  0x95   :  { %v684_v7 = vpop.xlane.xlu0 %87 }
  0x96   :  { %651 = vrcp.f32 %v684_v7 }
  0xa0   :  { %v687_v8 = vpop.eup %651 }
  0xa1   :  { %v93_v9 = vmul.f32 %v687_v8, %v91_v6 }
  0xa3   :  { %94 = vst [vmem:[#allocation2 + $0x10] sm:$0xff] %v93_v9  ;;  %v37_v9 = vld [vmem:[%s787_s0 + $0x8] sm:$0xff] }
  0xa4   :  { %v70_v11 = vsel %vm68_vm13, %v37_v9, 0.0 }
  0xaa   :  { %v144_v14 = vld [vmem:[#allocation2 + $0x17] ss:$0 sm:$0xff]  ;;  %v158_v20 = vld [vmem:[#allocation2 + $0x16] ss:$0 sm:$0xff]  ;;  %v172_v28 = vld [vmem:[#allocation2 + $0x15] ss:$0 sm:$0xff] }
  0xab   :  { %v145_v17 = vxor.u32 2147483648, %v144_v14  ;;  %v159_v23 = vxor.u32 2147483648, %v158_v20  ;;  %v173_v31 = vxor.u32 2147483648, %v172_v28  ;;  %v186_v36 = vld [vmem:[#allocation2 + $0x14] ss:$0 sm:$0xff] }
  0xac   :  { %v187_v39 = vxor.u32 2147483648, %v186_v36  ;;  %v200_v44 = vld [vmem:[#allocation2 + $0x13] ss:$0 sm:$0xff]  ;;  %v214_v52 = vld [vmem:[#allocation2 + $0x12] ss:$0 sm:$0xff] }
  0xad   :  { %v153_v18 = vmul.f32 %v145_v17, %v142_v13  ;;  %v149_v19 = vmul.f32 %v145_v17, %v131_v16  ;;  %v201_v47 = vxor.u32 2147483648, %v200_v44  ;;  %v215_v55 = vxor.u32 2147483648, %v214_v52  ;;  %v228_v60 = vld [vmem:[#allocation2 + $0x11] ss:$0 sm:$0xff]  ;;  %v242_v12 = vld [vmem:[#allocation2 + $0x10] ss:$0 sm:$0xff] }
  0xae   :  { %v229_v0 = vxor.u32 2147483648, %v228_v60 }
  0xaf   :  { %154 = vadd.xlane.f32.xlu1 %v153_v18  ;;  %150 = vadd.xlane.f32.xlu0 %v149_v19 }
 0x13c   :  { %v155_v21 = vpop.xlane.xlu1 %154  ;;  %v151_v22 = vpop.xlane.xlu0 %150 }
 0x13d   :  { %v156_v24 = vsel %vm148_vm7, %v155_v21, %v142_v13  ;;  %v152_v25 = vsel %vm148_vm7, %v151_v22, %v131_v16  ;;  %v243_v16 = vxor.u32 2147483648, %v242_v12  ;;  %v75_v22 = vsel %vm74_vm1, %v37_v9, 0.0 }
 0x13e   :  { %v167_v26 = vmul.f32 %v159_v23, %v156_v24  ;;  %v163_v27 = vmul.f32 %v159_v23, %v152_v25  ;;  %vm314_vm7 = vcmp.eq.s32.totalorder %v671_v1, 12  ;;  %vm426_vm1 = vcmp.eq.s32.totalorder %v671_v1, 6 }
 0x140   :  { %168 = vadd.xlane.f32.xlu0 %v167_v26  ;;  %164 = vadd.xlane.f32.xlu1 %v163_v27 }
 0x1cd   :  { %v165_v29 = vpop.xlane.xlu1 %164  ;;  %v169_v30 = vpop.xlane.xlu0 %168 }
 0x1ce   :  { %v166_v32 = vsel %vm162_vm8, %v165_v29, %v152_v25  ;;  %v170_v33 = vsel %vm162_vm8, %v169_v30, %v156_v24  ;;  %v124_v25 = vsel %vm123_vm2, -1.0, %v660_v15  ;;  %vm332_vm8 = vcmp.eq.s32.totalorder %v671_v1, 11 }
 0x1cf   :  { %v177_v34 = vmul.f32 %v173_v31, %v166_v32  ;;  %v181_v35 = vmul.f32 %v173_v31, %v170_v33  ;;  %vm448_vm2 = vcmp.eq.s32.totalorder %v671_v1, 5 }
 0x1d1   :  { %178 = vadd.xlane.f32.xlu1 %v177_v34  ;;  %182 = vadd.xlane.f32.xlu0 %v181_v35 }
 0x25e   :  { %v179_v37 = vpop.xlane.xlu1 %178  ;;  %v183_v38 = vpop.xlane.xlu0 %182 }
 0x25f   :  { %v180_v40 = vsel %vm176_vm9, %v179_v37, %v166_v32  ;;  %v184_v41 = vsel %vm176_vm9, %v183_v38, %v170_v33  ;;  %vm350_vm9 = vcmp.eq.s32.totalorder %v671_v1, 10 }
 0x260   :  { %v191_v42 = vmul.f32 %v187_v39, %v180_v40  ;;  %v195_v43 = vmul.f32 %v187_v39, %v184_v41 }
 0x262   :  { %192 = vadd.xlane.f32.xlu1 %v191_v42  ;;  %196 = vadd.xlane.f32.xlu0 %v195_v43 }
 0x2ef   :  { %v193_v45 = vpop.xlane.xlu1 %192  ;;  %v197_v46 = vpop.xlane.xlu0 %196 }
 0x2f0   :  { %v194_v48 = vsel %vm190_vm10, %v193_v45, %v180_v40  ;;  %v198_v49 = vsel %vm190_vm10, %v197_v46, %v184_v41  ;;  %vm52_vm10 = vcmp.eq.s32.totalorder %v673_v2, %v671_v1 }
 0x2f1   :  { %v205_v50 = vmul.f32 %v201_v47, %v194_v48  ;;  %v209_v51 = vmul.f32 %v201_v47, %v198_v49 }
 0x2f3   :  { %206 = vadd.xlane.f32.xlu1 %v205_v50  ;;  %210 = vadd.xlane.f32.xlu0 %v209_v51 }
 0x380   :  { %v207_v53 = vpop.xlane.xlu1 %206  ;;  %v211_v54 = vpop.xlane.xlu0 %210 }
 0x381   :  { %v208_v56 = vsel %vm204_vm11, %v207_v53, %v194_v48  ;;  %v212_v57 = vsel %vm204_vm11, %v211_v54, %v198_v49  ;;  %vm368_vm11 = vcmp.eq.s32.totalorder %v671_v1, 9 }
 0x382   :  { %v219_v58 = vmul.f32 %v215_v55, %v208_v56  ;;  %v223_v59 = vmul.f32 %v215_v55, %v212_v57 }
 0x384   :  { %220 = vadd.xlane.f32.xlu1 %v219_v58  ;;  %224 = vadd.xlane.f32.xlu0 %v223_v59 }
 0x411   :  { %v221_v62 = vpop.xlane.xlu1 %220  ;;  %v225_v63 = vpop.xlane.xlu0 %224 }
 0x412   :  { %v222_v3 = vsel %vm218_vm12, %v221_v62, %v208_v56  ;;  %v226_v4 = vsel %vm218_vm12, %v225_v63, %v212_v57  ;;  %vm57_vm12 = vcmp.le.s32.totalorder %v673_v2, %v671_v1 }
 0x413   :  { %v233_v5 = vmul.f32 %v229_v0, %v222_v3  ;;  %v237_v6 = vmul.f32 %v229_v0, %v226_v4  ;;  %vm58_vm13 = vmand %vm57_vm12, %vm48_vm0  ;;  %vm404_vm0 = vcmp.eq.s32.totalorder %v671_v1, 7 }
 0x415   :  { %234 = vadd.xlane.f32.xlu1 %v233_v5  ;;  %238 = vadd.xlane.f32.xlu0 %v237_v6 }
 0x419   :  { %71 = vadd.xlane.f32.xlu1 %v70_v11 }
 0x4a2   :  { %v235_v13 = vpop.xlane.xlu1 %234  ;;  %v239_v14 = vpop.xlane.xlu0 %238 }
 0x4a3   :  { %v236_v17 = vsel %vm232_vm14, %v235_v13, %v222_v3  ;;  %v240_v18 = vsel %vm232_vm14, %v239_v14, %v226_v4  ;;  %vm116_vm14 = vcmp.eq.s32.totalorder %v671_v1, %v673_v2 }
 0x4a4   :  { %v247_v19 = vmul.f32 %v243_v16, %v236_v17  ;;  %v251_v20 = vmul.f32 %v243_v16, %v240_v18 }
 0x4a6   :  { %248 = vadd.xlane.f32.xlu0 %v247_v19  ;;  %252 = vadd.xlane.f32.xlu1 %v251_v20  ;;  %v710_v21 = vpop.xlane.xlu1 %71 }
 0x4a7   :  { %653 = vrcp.f32 %v710_v21 }
 0x4b1   :  { %v716_v23 = vpop.eup %653 }
 0x4b2   :  { %v77_v24 = vmul.f32 %v716_v23, %v75_v22 }
 0x4b4   :  { %78 = vst [vmem:[#allocation2 + $0x8] sm:$0xff] %v77_v24 }
 0x4bb   :  { %v256_v26 = vld [vmem:[#allocation2 + $0xf] ss:$0 sm:$0xff]  ;;  %v274_v35 = vld [vmem:[#allocation2 + $0xe] ss:$0 sm:$0xff]  ;;  %v292_v46 = vld [vmem:[#allocation2 + $0xd] ss:$0 sm:$0xff] }
 0x4bc   :  { %v257_v27 = vxor.u32 2147483648, %v256_v26  ;;  %v275_v37 = vxor.u32 2147483648, %v274_v35  ;;  %v293_v48 = vxor.u32 2147483648, %v292_v46  ;;  %v310_v57 = vld [vmem:[#allocation2 + $0xc] ss:$0 sm:$0xff] }
 0x4bd   :  { %v311_v59 = vxor.u32 2147483648, %v310_v57  ;;  %v328_v6 = vld [vmem:[#allocation2 + $0xb] ss:$0 sm:$0xff]  ;;  %v346_v22 = vld [vmem:[#allocation2 + $0xa] ss:$0 sm:$0xff] }
 0x4be   :  { %v261_v28 = vmul.f32 %v257_v27, %v124_v25  ;;  %v329_v11 = vxor.u32 2147483648, %v328_v6 }
 0x4c0   :  { %262 = vadd.xlane.f32.xlu0 %v261_v28 }
 0x533   :  { %v249_v29 = vpop.xlane.xlu0 %248  ;;  %v253_v30 = vpop.xlane.xlu1 %252 }
 0x534   :  { %v250_v31 = vsel %vm246_vm3, %v249_v29, %v236_v17  ;;  %v254_v32 = vsel %vm246_vm3, %v253_v30, %v240_v18  ;;  %vm470_vm3 = vcmp.eq.s32.totalorder %v671_v1, 4 }
 0x535   :  { %v265_v33 = vmul.f32 %v257_v27, %v250_v31  ;;  %v269_v34 = vmul.f32 %v257_v27, %v254_v32 }
 0x537   :  { %266 = vadd.xlane.f32.xlu1 %v265_v33  ;;  %270 = vadd.xlane.f32.xlu0 %v269_v34  ;;  %v364_v34 = vld [vmem:[#allocation2 + $0x9] ss:$0 sm:$0xff] }
 0x54d   :  { %v263_v36 = vpop.xlane.xlu0 %262 }
 0x54e   :  { %v264_v38 = vsel %vm260_vm4, %v263_v36, %v124_v25  ;;  %v347_v25 = vxor.u32 2147483648, %v346_v22  ;;  %v365_v36 = vxor.u32 2147483648, %v364_v34 }
 0x54f   :  { %v279_v39 = vmul.f32 %v275_v37, %v264_v38 }
 0x551   :  { %280 = vadd.xlane.f32.xlu1 %v279_v39 }
 0x5c4   :  { %v271_v40 = vpop.xlane.xlu0 %270  ;;  %v267_v41 = vpop.xlane.xlu1 %266 }
 0x5c5   :  { %v272_v42 = vsel %vm260_vm4, %v271_v40, %v254_v32  ;;  %v268_v43 = vsel %vm260_vm4, %v267_v41, %v250_v31  ;;  %vm492_vm4 = vcmp.eq.s32.totalorder %v671_v1, 3 }
 0x5c6   :  { %v287_v44 = vmul.f32 %v275_v37, %v272_v42  ;;  %v283_v45 = vmul.f32 %v275_v37, %v268_v43 }
 0x5c8   :  { %288 = vadd.xlane.f32.xlu1 %v287_v44  ;;  %284 = vadd.xlane.f32.xlu0 %v283_v45  ;;  %v35_v45 = vld [vmem:[%s787_s0] sm:$0xff] }
 0x5c9   :  { %v54_v46 = vsel %vm52_vm10, %v35_v45, 0.0 }
 0x5de   :  { %v281_v47 = vpop.xlane.xlu1 %280 }
 0x5df   :  { %v282_v49 = vsel %vm278_vm5, %v281_v47, %v264_v38  ;;  %v382_v47 = vld [vmem:[#allocation2 + $0x8] ss:$0 sm:$0xff] }
 0x5e0   :  { %v297_v50 = vmul.f32 %v293_v48, %v282_v49 }
 0x5e2   :  { %298 = vadd.xlane.f32.xlu0 %v297_v50 }
 0x655   :  { %v285_v51 = vpop.xlane.xlu0 %284  ;;  %v289_v52 = vpop.xlane.xlu1 %288 }
 0x656   :  { %v286_v53 = vsel %vm278_vm5, %v285_v51, %v268_v43  ;;  %v290_v54 = vsel %vm278_vm5, %v289_v52, %v272_v42  ;;  %vm514_vm5 = vcmp.eq.s32.totalorder %v671_v1, 2 }
 0x657   :  { %v301_v55 = vmul.f32 %v293_v48, %v286_v53  ;;  %v305_v56 = vmul.f32 %v293_v48, %v290_v54 }
 0x659   :  { %302 = vadd.xlane.f32.xlu1 %v301_v55  ;;  %306 = vadd.xlane.f32.xlu0 %v305_v56 }
 0x66f   :  { %v299_v58 = vpop.xlane.xlu0 %298 }
 0x670   :  { %v300_v60 = vsel %vm296_vm6, %v299_v58, %v282_v49  ;;  %v383_v49 = vxor.u32 2147483648, %v382_v47 }
 0x671   :  { %v315_v61 = vmul.f32 %v311_v59, %v300_v60 }
 0x673   :  { %316 = vadd.xlane.f32.xlu1 %v315_v61 }
 0x6e6   :  { %v307_v62 = vpop.xlane.xlu0 %306  ;;  %v303_v63 = vpop.xlane.xlu1 %302 }
 0x6e7   :  { %v308_v0 = vsel %vm296_vm6, %v307_v62, %v290_v54  ;;  %v304_v3 = vsel %vm296_vm6, %v303_v63, %v286_v53  ;;  %v117_v63 = vsel %vm116_vm14, -1.0, %v660_v15  ;;  %vm100_vm6 = vcmp.eq.s32.totalorder %v691_v10, %v671_v1 }
 0x6e8   :  { %v323_v4 = vmul.f32 %v311_v59, %v308_v0  ;;  %v319_v5 = vmul.f32 %v311_v59, %v304_v3  ;;  %v59_v59 = vsel %vm58_vm13, %v35_v45, 0.0 }
 0x6ea   :  { %324 = vadd.xlane.f32.xlu1 %v323_v4  ;;  %320 = vadd.xlane.f32.xlu0 %v319_v5 }
 0x700   :  { %v317_v9 = vpop.xlane.xlu1 %316 }
 0x701   :  { %v318_v12 = vsel %vm314_vm7, %v317_v9, %v300_v60 }
 0x702   :  { %v333_v13 = vmul.f32 %v329_v11, %v318_v12 }
 0x704   :  { %334 = vadd.xlane.f32.xlu0 %v333_v13 }
 0x777   :  { %v321_v14 = vpop.xlane.xlu0 %320  ;;  %v325_v16 = vpop.xlane.xlu1 %324 }
 0x778   :  { %v322_v17 = vsel %vm314_vm7, %v321_v14, %v304_v3  ;;  %v326_v18 = vsel %vm314_vm7, %v325_v16, %v308_v0  ;;  %vm536_vm7 = vcmp.eq.s32.totalorder %v671_v1, 1 }
 0x779   :  { %v337_v19 = vmul.f32 %v329_v11, %v322_v17  ;;  %v341_v20 = vmul.f32 %v329_v11, %v326_v18 }
 0x77b   :  { %338 = vadd.xlane.f32.xlu1 %v337_v19  ;;  %342 = vadd.xlane.f32.xlu0 %v341_v20 }
 0x791   :  { %v335_v24 = vpop.xlane.xlu0 %334 }
 0x792   :  { %v336_v26 = vsel %vm332_vm8, %v335_v24, %v318_v12 }
 0x793   :  { %v351_v27 = vmul.f32 %v347_v25, %v336_v26 }
 0x795   :  { %352 = vadd.xlane.f32.xlu1 %v351_v27 }
 0x808   :  { %v343_v28 = vpop.xlane.xlu0 %342  ;;  %v339_v29 = vpop.xlane.xlu1 %338 }
 0x809   :  { %v344_v30 = vsel %vm332_vm8, %v343_v28, %v326_v18  ;;  %v340_v31 = vsel %vm332_vm8, %v339_v29, %v322_v17  ;;  %vm557_vm8 = vcmp.eq.s32.totalorder %v671_v1, 0 }
 0x80a   :  { %v359_v32 = vmul.f32 %v347_v25, %v344_v30  ;;  %v355_v33 = vmul.f32 %v347_v25, %v340_v31 }
 0x80c   :  { %360 = vadd.xlane.f32.xlu1 %v359_v32  ;;  %356 = vadd.xlane.f32.xlu0 %v355_v33 }
 0x822   :  { %v353_v35 = vpop.xlane.xlu1 %352 }
 0x823   :  { %v354_v37 = vsel %vm350_vm9, %v353_v35, %v336_v26 }
 0x824   :  { %v369_v38 = vmul.f32 %v365_v36, %v354_v37 }
 0x826   :  { %370 = vadd.xlane.f32.xlu0 %v369_v38 }
 0x899   :  { %v357_v39 = vpop.xlane.xlu0 %356  ;;  %v361_v40 = vpop.xlane.xlu1 %360 }
 0x89a   :  { %v358_v41 = vsel %vm350_vm9, %v357_v39, %v340_v31  ;;  %v362_v42 = vsel %vm350_vm9, %v361_v40, %v344_v30  ;;  %vm581_vm9 = vweird.f32 %v710_v21 }
 0x89b   :  { %v373_v43 = vmul.f32 %v365_v36, %v358_v41  ;;  %v377_v44 = vmul.f32 %v365_v36, %v362_v42 }
 0x89d   :  { %374 = vadd.xlane.f32.xlu1 %v373_v43  ;;  %378 = vadd.xlane.f32.xlu0 %v377_v44 }
 0x8a1   :  { %55 = vadd.xlane.f32.xlu1 %v54_v46 }
 0x8b3   :  { %v371_v48 = vpop.xlane.xlu0 %370 }
 0x8b4   :  { %v372_v50 = vsel %vm368_vm11, %v371_v48, %v354_v37 }
 0x8b5   :  { %v387_v51 = vmul.f32 %v383_v49, %v372_v50 }
 0x8b7   :  { %388 = vadd.xlane.f32.xlu0 %v387_v51 }
 0x92a   :  { %v379_v52 = vpop.xlane.xlu0 %378  ;;  %v375_v53 = vpop.xlane.xlu1 %374 }
 0x92b   :  { %v380_v54 = vsel %vm368_vm11, %v379_v52, %v362_v42  ;;  %v376_v55 = vsel %vm368_vm11, %v375_v53, %v358_v41  ;;  %vm587_vm11 = vweird.f32 %v684_v7 }
 0x92c   :  { %v395_v56 = vmul.f32 %v383_v49, %v380_v54  ;;  %v391_v57 = vmul.f32 %v383_v49, %v376_v55 }
 0x92e   :  { %396 = vadd.xlane.f32.xlu0 %v395_v56  ;;  %392 = vadd.xlane.f32.xlu1 %v391_v57  ;;  %v734_v58 = vpop.xlane.xlu1 %55 }
 0x92f   :  { %655 = vrcp.f32 %v734_v58  ;;  %vm576_vm10 = vweird.f32 %v734_v58 }
 0x939   :  { %v741_v60 = vpop.eup %655 }
 0x93a   :  { %v61_v61 = vmul.f32 %v741_v60, %v59_v59 }
 0x93c   :  { %62 = vst [vmem:[#allocation2] sm:$0xff] %v61_v61 }
 0x943   :  { %v400_v62 = vld [vmem:[#allocation2 + $0x7] ss:$0 sm:$0xff]  ;;  %v422_v2 = vld [vmem:[#allocation2 + $0x6] ss:$0 sm:$0xff]  ;;  %v444_v31 = vld [vmem:[#allocation2 + $0x5] ss:$0 sm:$0xff] }
 0x944   :  { %v389_v0 = vpop.xlane.xlu0 %388  ;;  %v401_v3 = vxor.u32 2147483648, %v400_v62  ;;  %v423_v18 = vxor.u32 2147483648, %v422_v2  ;;  %v445_v34 = vxor.u32 2147483648, %v444_v31  ;;  %v466_v45 = vld [vmem:[#allocation2 + $0x4] ss:$0 sm:$0xff] }
 0x945   :  { %v390_v4 = vsel %vm386_vm15, %v389_v0, %v372_v50  ;;  %v467_v48 = vxor.u32 2147483648, %v466_v45  ;;  %v488_v61 = vld [vmem:[#allocation2 + $0x3] ss:$0 sm:$0xff]  ;;  %v510_v2 = vld [vmem:[#allocation2 + $0x2] ss:$0 sm:$0xff]  ;;  %v41_v45 = vld [vmem:[%s787_s0 + $0x18] sm:$0xff] }
 0x946   :  { %v409_v5 = vmul.f32 %v401_v3, %v390_v4  ;;  %v405_v6 = vmul.f32 %v401_v3, %v117_v63  ;;  %v489_v0 = vxor.u32 2147483648, %v488_v61  ;;  %v532_v31 = vld [vmem:[#allocation2 + $0x1] ss:$0 sm:$0xff] }
 0x948   :  { %410 = vadd.xlane.f32.xlu0 %v409_v5  ;;  %406 = vadd.xlane.f32.xlu1 %v405_v6 }
 0x9bb   :  { %v397_v9 = vpop.xlane.xlu0 %396  ;;  %v393_v11 = vpop.xlane.xlu1 %392 }
 0x9bc   :  { %v398_v12 = vsel %vm386_vm15, %v397_v9, %v380_v54  ;;  %v394_v13 = vsel %vm386_vm15, %v393_v11, %v376_v55 }
 0x9bd   :  { %v417_v14 = vmul.f32 %v401_v3, %v398_v12  ;;  %v413_v16 = vmul.f32 %v401_v3, %v394_v13 }
 0x9bf   :  { %418 = vadd.xlane.f32.xlu0 %v417_v14  ;;  %414 = vadd.xlane.f32.xlu1 %v413_v16 }
 0x9d5   :  { %v411_v17 = vpop.xlane.xlu0 %410  ;;  %v407_v15 = vpop.xlane.xlu1 %406 }
 0x9d6   :  { %v412_v19 = vsel %vm404_vm0, %v411_v17, %v390_v4  ;;  %v408_v20 = vsel %vm404_vm0, %v407_v15, %v117_v63 }
 0x9d7   :  { %v431_v22 = vmul.f32 %v423_v18, %v412_v19  ;;  %v427_v24 = vmul.f32 %v423_v18, %v408_v20 }
 0x9d9   :  { %432 = vadd.xlane.f32.xlu0 %v431_v22  ;;  %428 = vadd.xlane.f32.xlu1 %v427_v24 }
 0xa4c   :  { %v419_v25 = vpop.xlane.xlu0 %418  ;;  %v415_v26 = vpop.xlane.xlu1 %414 }
 0xa4d   :  { %v420_v27 = vsel %vm404_vm0, %v419_v25, %v398_v12  ;;  %v416_v28 = vsel %vm404_vm0, %v415_v26, %v394_v13 }
 0xa4e   :  { %v439_v29 = vmul.f32 %v423_v18, %v420_v27  ;;  %v435_v30 = vmul.f32 %v423_v18, %v416_v28  ;;  %v511_v18 = vxor.u32 2147483648, %v510_v2 }
 0xa50   :  { %440 = vadd.xlane.f32.xlu0 %v439_v29  ;;  %436 = vadd.xlane.f32.xlu1 %v435_v30 }
 0xa66   :  { %v433_v32 = vpop.xlane.xlu0 %432  ;;  %v429_v33 = vpop.xlane.xlu1 %428 }
 0xa67   :  { %v434_v35 = vsel %vm426_vm1, %v433_v32, %v412_v19  ;;  %v430_v36 = vsel %vm426_vm1, %v429_v33, %v408_v20 }
 0xa68   :  { %v453_v37 = vmul.f32 %v445_v34, %v434_v35  ;;  %v449_v38 = vmul.f32 %v445_v34, %v430_v36 }
 0xa6a   :  { %454 = vadd.xlane.f32.xlu0 %v453_v37  ;;  %450 = vadd.xlane.f32.xlu1 %v449_v38 }
 0xadd   :  { %v441_v39 = vpop.xlane.xlu0 %440  ;;  %v437_v40 = vpop.xlane.xlu1 %436 }
 0xade   :  { %v442_v41 = vsel %vm426_vm1, %v441_v39, %v420_v27  ;;  %v438_v42 = vsel %vm426_vm1, %v437_v40, %v416_v28 }
 0xadf   :  { %v461_v43 = vmul.f32 %v445_v34, %v442_v41  ;;  %v457_v44 = vmul.f32 %v445_v34, %v438_v42  ;;  %v533_v34 = vxor.u32 2147483648, %v532_v31 }
 0xae1   :  { %462 = vadd.xlane.f32.xlu0 %v461_v43  ;;  %458 = vadd.xlane.f32.xlu1 %v457_v44 }
 0xaf7   :  { %v455_v46 = vpop.xlane.xlu0 %454  ;;  %v451_v47 = vpop.xlane.xlu1 %450 }
 0xaf8   :  { %v456_v49 = vsel %vm448_vm2, %v455_v46, %v434_v35  ;;  %v452_v50 = vsel %vm448_vm2, %v451_v47, %v430_v36  ;;  %v102_v46 = vsel %vm100_vm6, %v41_v45, 0.0  ;;  %v553_v47 = vld [vmem:[#allocation2] ss:$0 sm:$0xff] }
 0xaf9   :  { %v475_v51 = vmul.f32 %v467_v48, %v456_v49  ;;  %v471_v52 = vmul.f32 %v467_v48, %v452_v50 }
 0xafb   :  { %476 = vadd.xlane.f32.xlu0 %v475_v51  ;;  %472 = vadd.xlane.f32.xlu1 %v471_v52 }
 0xb6e   :  { %v463_v53 = vpop.xlane.xlu0 %462  ;;  %v459_v54 = vpop.xlane.xlu1 %458 }
 0xb6f   :  { %v464_v55 = vsel %vm448_vm2, %v463_v53, %v442_v41  ;;  %v460_v56 = vsel %vm448_vm2, %v459_v54, %v438_v42 }
 0xb70   :  { %v483_v57 = vmul.f32 %v467_v48, %v464_v55  ;;  %v479_v59 = vmul.f32 %v467_v48, %v460_v56 }
 0xb72   :  { %484 = vadd.xlane.f32.xlu0 %v483_v57  ;;  %480 = vadd.xlane.f32.xlu1 %v479_v59 }
 0xb88   :  { %v477_v62 = vpop.xlane.xlu0 %476  ;;  %v473_v63 = vpop.xlane.xlu1 %472 }
 0xb89   :  { %v478_v3 = vsel %vm470_vm3, %v477_v62, %v456_v49  ;;  %v474_v4 = vsel %vm470_vm3, %v473_v63, %v452_v50  ;;  %v554_v50 = vxor.u32 2147483648, %v553_v47 }
 0xb8a   :  { %v497_v5 = vmul.f32 %v489_v0, %v478_v3  ;;  %v493_v6 = vmul.f32 %v489_v0, %v474_v4 }
 0xb8c   :  { %498 = vadd.xlane.f32.xlu0 %v497_v5  ;;  %494 = vadd.xlane.f32.xlu1 %v493_v6 }
 0xbff   :  { %v485_v9 = vpop.xlane.xlu0 %484  ;;  %v481_v11 = vpop.xlane.xlu1 %480 }
 0xc00   :  { %v486_v12 = vsel %vm470_vm3, %v485_v9, %v464_v55  ;;  %v482_v13 = vsel %vm470_vm3, %v481_v11, %v460_v56 }
 0xc01   :  { %v505_v14 = vmul.f32 %v489_v0, %v486_v12  ;;  %v501_v16 = vmul.f32 %v489_v0, %v482_v13 }
 0xc03   :  { %506 = vadd.xlane.f32.xlu0 %v505_v14  ;;  %502 = vadd.xlane.f32.xlu1 %v501_v16 }
 0xc19   :  { %v499_v17 = vpop.xlane.xlu0 %498  ;;  %v495_v15 = vpop.xlane.xlu1 %494 }
 0xc1a   :  { %v500_v19 = vsel %vm492_vm4, %v499_v17, %v478_v3  ;;  %v496_v20 = vsel %vm492_vm4, %v495_v15, %v474_v4 }
 0xc1b   :  { %v519_v22 = vmul.f32 %v511_v18, %v500_v19  ;;  %v515_v24 = vmul.f32 %v511_v18, %v496_v20 }
 0xc1d   :  { %520 = vadd.xlane.f32.xlu0 %v519_v22  ;;  %516 = vadd.xlane.f32.xlu1 %v515_v24 }
 0xc90   :  { %v507_v25 = vpop.xlane.xlu0 %506  ;;  %v503_v26 = vpop.xlane.xlu1 %502 }
 0xc91   :  { %v508_v27 = vsel %vm492_vm4, %v507_v25, %v486_v12  ;;  %v504_v28 = vsel %vm492_vm4, %v503_v26, %v482_v13 }
 0xc92   :  { %v527_v29 = vmul.f32 %v511_v18, %v508_v27  ;;  %v523_v30 = vmul.f32 %v511_v18, %v504_v28 }
 0xc94   :  { %528 = vadd.xlane.f32.xlu0 %v527_v29  ;;  %524 = vadd.xlane.f32.xlu1 %v523_v30 }
 0xcaa   :  { %v521_v32 = vpop.xlane.xlu0 %520  ;;  %v517_v33 = vpop.xlane.xlu1 %516 }
 0xcab   :  { %v522_v35 = vsel %vm514_vm5, %v521_v32, %v500_v19  ;;  %v518_v36 = vsel %vm514_vm5, %v517_v33, %v496_v20 }
 0xcac   :  { %v541_v37 = vmul.f32 %v533_v34, %v522_v35  ;;  %v537_v38 = vmul.f32 %v533_v34, %v518_v36 }
 0xcae   :  { %542 = vadd.xlane.f32.xlu0 %v541_v37  ;;  %538 = vadd.xlane.f32.xlu1 %v537_v38 }
 0xd21   :  { %v529_v39 = vpop.xlane.xlu0 %528  ;;  %v525_v40 = vpop.xlane.xlu1 %524 }
 0xd22   :  { %v530_v41 = vsel %vm514_vm5, %v529_v39, %v508_v27  ;;  %v526_v42 = vsel %vm514_vm5, %v525_v40, %v504_v28 }
 0xd23   :  { %v549_v43 = vmul.f32 %v533_v34, %v530_v41  ;;  %v545_v44 = vmul.f32 %v533_v34, %v526_v42 }
 0xd25   :  { %550 = vadd.xlane.f32.xlu0 %v549_v43  ;;  %546 = vadd.xlane.f32.xlu1 %v545_v44 }
 0xd29   :  { %103 = vadd.xlane.f32.xlu1 %v102_v46 }
 0xd3b   :  { %v543_v48 = vpop.xlane.xlu0 %542  ;;  %v539_v49 = vpop.xlane.xlu1 %538 }
 0xd3c   :  { %v544_v51 = vsel %vm536_vm7, %v543_v48, %v522_v35  ;;  %v540_v52 = vsel %vm536_vm7, %v539_v49, %v518_v36 }
 0xd3d   :  { %v562_v53 = vmul.f32 %v554_v50, %v544_v51  ;;  %v558_v54 = vmul.f32 %v554_v50, %v540_v52 }
 0xd3f   :  { %563 = vadd.xlane.f32.xlu1 %v562_v53  ;;  %559 = vadd.xlane.f32.xlu0 %v558_v54 }
 0xdb2   :  { %v551_v55 = vpop.xlane.xlu0 %550  ;;  %v547_v56 = vpop.xlane.xlu1 %546 }
 0xdb3   :  { %v552_v57 = vsel %vm536_vm7, %v551_v55, %v530_v41  ;;  %v548_v10 = vsel %vm536_vm7, %v547_v56, %v526_v42 }
 0xdb4   :  { %v570_v59 = vmul.f32 %v554_v50, %v552_v57  ;;  %v566_v61 = vmul.f32 %v554_v50, %v548_v10 }
 0xdb6   :  { %571 = vadd.xlane.f32.xlu1 %v570_v59  ;;  %567 = vadd.xlane.f32.xlu0 %v566_v61  ;;  %v104_v62 = vpop.xlane.xlu1 %103 }
 0xdb7   :  { %657 = vrcp.f32 %v104_v62  ;;  %vm593_vm12 = vweird.f32 %v104_v62 }
 0xdc1   :  { %v658_v63 = vpop.eup %657 }
 0xdcc   :  { %v560_v0 = vpop.xlane.xlu0 %559  ;;  %v564_v3 = vpop.xlane.xlu1 %563 }
 0xdcd   :  { %v561_v4 = vsel %vm557_vm8, %v560_v0, %v540_v52  ;;  %v565_v5 = vsel %vm557_vm8, %v564_v3, %v544_v51 }
 0xdce   :  { %v575_v6 = vmul.f32 %v741_v60, %v561_v4  ;;  %v580_v9 = vmul.f32 %v716_v23, %v565_v5 }
 0xdd0   :  { %v577_v11 = vsel %vm576_vm10, %v561_v4, %v575_v6  ;;  %v582_v12 = vsel %vm581_vm9, %v565_v5, %v580_v9 }
 0xdd1   :  { %631 = vst [vmem:[%s788_s1] sm:$0xff] %v577_v11  ;;  %633 = vst [vmem:[%s788_s1 + $0x8] sm:$0xff] %v582_v12 }
 0xe43   :  { %v568_v13 = vpop.xlane.xlu0 %567  ;;  %v572_v14 = vpop.xlane.xlu1 %571 }
 0xe44   :  { %v569_v60 = vsel %vm557_vm8, %v568_v13, %v548_v10  ;;  %v573_v21 = vsel %vm557_vm8, %v572_v14, %v552_v57 }
 0xe45   :  { %v586_v23 = vmul.f32 %v687_v8, %v569_v60  ;;  %v592_v58 = vmul.f32 %v658_v63, %v573_v21 }
 0xe47   :  { %v588_v16 = vsel %vm587_vm11, %v569_v60, %v586_v23  ;;  %v594_v2 = vsel %vm593_vm12, %v573_v21, %v592_v58 }
 0xe48   :  { %635 = vst [vmem:[%s788_s1 + $0x10] sm:$0xff] %v588_v16  ;;  %637 = vst [vmem:[%s788_s1 + $0x18] sm:$0xff] %v594_v2 }

// kernel: solvels_forward.2
= control target key start
LH: loop header
LB: loop body
LE: loop exit
PB: predicated region body
PF: predicated region fallthrough
CT: control target
= control target key end

     0   :  { %s912_s11 = smov 0   ;;  %s914_s12 = smov 0   ;;  %s975_s0 = inlined_call_operand.vmem [shape: bf16[2,26,289], index: 0, kind: input, shape index: {}]   ;;  %s976_s1 = inlined_call_operand.<no memory space> [shape: bf16[], index: 1, kind: input, shape index: {}]   ;;  %s977_s2 = inlined_call_operand.vmem [shape: f32[1,2,32,32], index: 2, kind: output, shape index: {}]  }
   0x1   :  { %v7_v0 = vstv %s976_s1  ;;  %s916_s13 = smov 0  }
   0x2   :  { %v910_v1 = vunpack.i.l.bf16 %v7_v0 }
   0x3 LB: > { %s32_s1 = sadd.s32 1, %s885_s12  ;;  %p789_p0 = scmp.ge.s32.totalorder %s889_s13, 1  ;;  %s889_s13 = sphi %s916_s13, %s17_s13   ;;  %s885_s12 = sphi %s914_s12, %s979_s12   ;;  %s881_s11 = sphi %s912_s11, %s978_s11  }
   0x4   : > { %p34_p1 = scmp.ge.s32.totalorder %s32_s1, 2  ;;  %p129_p2 = scmp.lt.s32.totalorder %s889_s13, 3 }
   0x6   : > { %s981_s1 = smov (%p34_p1, %s32_s1), 0  ;;  %p130_p3 = pnand %p789_p0, %p129_p2 }
   0x8   : > { %133 = sbr.rel (%p130_p3) target bundleno = 287 (0x11f), region = 24 }
   0xf   : > { %p164_p4 = scmp.lt.s32.totalorder %s881_s11, 1  ;;  %v253_v2 = vlaneseq  ;;  %v891_v25 = vmov 0.0   ;;  %vm526_vm2 = vcmask 261120  }
  0x10   : > { %527 = vst.msk [vmem:[#allocation2] sm:$0xff] %vm526_vm2, %v891_v25  ;;  %528 = vst.msk [vmem:[#allocation2 + $0x8] sm:$0xff] %vm526_vm2, %v891_v25 }
  0x11   : > { %s983_s11 = smov (!%p164_p4, %s881_s11), 1  ;;  %v254_v3 = vand.u32 127, %v253_v2  ;;  %v437_v4 = vshrl.u32 %v253_v2, 7  ;;  %529 = vst.msk [vmem:[#allocation2 + $0x10] sm:$0xff] %vm526_vm2, %v891_v25  ;;  %530 = vst.msk [vmem:[#allocation2 + $0x18] sm:$0xff] %vm526_vm2, %v891_v25 }
  0x12   : > { %s836_s14 = smul.u32 48, %s983_s11  ;;  %s812_s18 = sshll.u32 %s983_s11, 5 }
  0x13   : > { %v256_v5 = vadd.s32 256, %v254_v3  ;;  %v438_v6 = vadd.s32 24, %v437_v4  ;;  %s184_s21 = scalar_lea.vmem %s977_s2, %s812_s18 }
  0x14   : > { %s171_s17 = scalar_lea.vmem %s975_s0, %s836_s14 }
  0x15   : > { %v185_v7 = vld [vmem:[%s171_s17] sm:$0xff]   ;;  %v794_v8 = vld [vmem:[%s171_s17 + $0x8] sm:$0xff]   ;;  %vm257_vm0 = vcmp.lt.s32.totalorder %v256_v5, 289  ;;  %v796_v9 = vld [vmem:[%s171_s17 + $0x10] sm:$0xf]  ;;  %vm439_vm1 = vcmp.lt.s32.totalorder %v438_v6, 26 }
  0x16   : > { %202 = vst [vmem:[#allocation8] sm:$0xff] %v185_v7   ;;  %v239_v10 = vunpack.c.l.bf16 %v794_v8  ;;  %v815_v11 = vunpack.c.h.bf16 %v794_v8  ;;  %303 = vst [vmem:[#allocation8 + $0x10] sm:$0xf] %v796_v9  ;;  %v797_v12 = vld [vmem:[%s171_s17 + $0x14] ss:$12 sps:$4 sm:$0xff]   ;;  %v865_v14 = vld [vmem:[%s171_s17 + $0x18] sm:$0xff]  }
  0x17   : > { %v319_v13 = vunpack.c.l.bf16 %v797_v12  ;;  %v801_v15 = vld [vmem:[%s171_s17 + $0x24] sm:$0xff]   ;;  %v399_v16 = vunpack.c.h.bf16 %v797_v12  ;;  %v803_v17 = vld [vmem:[%s171_s17 + $0x2c] sm:$0xf] }
  0x18   : > { %v258_v18 = vsel %vm257_vm0, %v239_v10, %v910_v1  ;;  %v434_v19 = vunpack.c.l.bf16 %v801_v15  ;;  %v463_v20 = vunpack.c.h.bf16 %v801_v15  ;;  %v497_v21 = vunpack.c.l.bf16 %v803_v17  ;;  %v539_v47 = vld [vmem:[#allocation2] sm:$0xff]  ;;  %v540_v53 = vld [vmem:[#allocation2 + $0x8] sm:$0xff]  ;;  %v541_v58 = vld [vmem:[#allocation2 + $0x10] sm:$0xff] }
  0x19   : > { %v816_v22 = vpack.c.bf16 %v815_v11, %v258_v18  ;;  %v338_v23 = vsel %vm257_vm0, %v319_v13, %v910_v1  ;;  %v418_v24 = vsel %vm257_vm0, %v399_v16, %v910_v1  ;;  %v542_v62 = vld [vmem:[#allocation2 + $0x18] sm:$0xff] }
  0x1a   : > { %v340_v26 = vpack.c.bf16 %v891_v25, %v338_v23  ;;  %v440_v27 = vsel %vm439_vm1, %v434_v19, %v910_v1  ;;  %v469_v28 = vsel %vm439_vm1, %v463_v20, %v910_v1  ;;  %v420_v29 = vpack.c.bf16 %v891_v25, %v418_v24 }
  0x1b   : > { %817 = vst [vmem:[#allocation8 + $0x8] sm:$0xff] %v816_v22   ;;  %v449_v30 = vpack.c.bf16 %v891_v25, %v440_v27  ;;  %v479_v31 = vpack.c.bf16 %v891_v25, %v469_v28  ;;  %v508_v32 = vsel %vm439_vm1, %v497_v21, %v910_v1 }
  0x1c   : > { %342 = vst [vmem:[#allocation8 + $0x14] sm:$0xf] %v340_v26  ;;  %422 = vst [vmem:[#allocation8 + $0x20] sm:$0xf] %v420_v29  ;;  %v516_v33 = vsel %vm257_vm0, %v508_v32, %v910_v1 }
  0x1d   : > { %451 = vst [vmem:[#allocation8 + $0x24] sm:$0xf] %v449_v30  ;;  %481 = vst [vmem:[#allocation8 + $0x28] sm:$0xf] %v479_v31  ;;  %v518_v34 = vpack.c.bf16 %v891_v25, %v516_v33  ;;  %v531_v35 = vld [vmem:[#allocation8] sm:$0xff] }
  0x1e   : > { %v862_v37 = vld [vmem:[#allocation8 + $0x4] ss:$12 sps:$4 sm:$0xff]  }
  0x1f   : > { %520 = vst [vmem:[#allocation8 + $0x2c] sm:$0xf] %v518_v34  ;;  %575 = vmatprep.subr.bf16.mxu0 %v862_v37  ;;  %607 = vmatprep.mubr.bf16.mxu0 %v862_v37 }
  0x22   : > { %v533_v36 = vld [vmem:[#allocation8 + $0xc] sm:$0xff] }
  0x23   : > { %v864_v38 = vld [vmem:[#allocation8 + $0x8] ss:$12 sps:$4 sm:$0xff]   ;;  %v804_v39 = vcombine.low %v531_v35, %v533_v36 }
  0x24   : > { %v537_v40 = vld [vmem:[#allocation8 + $0x24] sm:$0xff]  ;;  %828 = vmatprep.subr.bf16.mxu1 %v864_v38  ;;  %832 = vmatprep.mubr.bf16.mxu1 %v864_v38 }
  0x25   : > { %576 = vmatpush1.bf16.xpose.msra.mxu0 %v804_v39  ;;  %v808_v41 = vcombine.high %v865_v14, %v537_v40  ;;  %829 = vmatpush3.bf16.xpose.msra.mxu1 %v864_v38  ;;  %v807_v43 = vcombine.low %v865_v14, %v537_v40 }
  0x26   : > { %v866_v42 = vld [vmem:[#allocation8 + $0x20] ss:$12 sps:$4 sm:$0xff]  }
  0x27   : > { %577 = vmatprep.subr.bf16.mxu0 %v808_v41  ;;  %830 = vmatprep.subr.bf16.mxu1 %v866_v42 }
  0x2d   : > { %578 = vmatpush1.bf16.xpose.msra.mxu0 %v807_v43  ;;  %831 = vmatpush3.bf16.xpose.msra.mxu1 %v866_v42 }
  0x34   : > { %608 = vmatmul.mubr.bf16.vlgmr.msra.gmra.mrb[0].mxu0 %v804_v39  ;;  %833 = vmatmul.mubr.bf16.vlgmr.msra.gmra.mrb[0].mxu1 %v866_v42 }
  0x35   : > { %615 = vmatprep.mubr.bf16.mxu0 %v808_v41 }
  0x3c   : > { %616 = vmatmul.mubr.bf16.gmra.mrb[4].mxu0 %v807_v43 }
 0x107   : > { %v609_v44 = vpop.f32.mrb[0].mxu0  ;;  %v834_v45 = vpop.f32.mrb[0].mxu1 }
 0x108   : > { %v611_v46 = vpop.f32.mrb[1].mxu0  ;;  %v658_v48 = vpop.f32.mrb[1].mxu1 }
 0x109   : > { %v612_v49 = vpop.f32.mrb[2].mxu0  ;;  %v659_v50 = vadd.f32 %v658_v48, %v609_v44  ;;  %v835_v51 = vpop.f32.mrb[2].mxu1 }
 0x10a   : > { %v614_v52 = vpop.f32.mrb[3].mxu0  ;;  %v661_v54 = vpop.f32.mrb[3].mxu1 }
 0x10b   : > { %v673_v55 = vadd.f32 %v659_v50, %v539_v47  ;;  %v662_v56 = vadd.f32 %v661_v54, %v612_v49 }
 0x10d   : > { %678 = vst.msk [vmem:[#allocation2] sm:$0xff] %vm526_vm2, %v673_v55  ;;  %v674_v57 = vadd.f32 %v662_v56, %v540_v53 }
 0x10f   : > { %v617_v59 = vpop.f32.mrb[4].mxu0  ;;  %679 = vst.msk [vmem:[#allocation2 + $0x8] sm:$0xff] %vm526_vm2, %v674_v57 }
 0x110   : > { %v667_v60 = vadd.f32 %v834_v45, %v617_v59  ;;  %v619_v61 = vpop.f32.mrb[5].mxu0 }
 0x111   : > { %v620_v63 = vpop.f32.mrb[6].mxu0 }
 0x112   : > { %v675_v0 = vadd.f32 %v667_v60, %v541_v58  ;;  %v670_v2 = vadd.f32 %v835_v51, %v620_v63  ;;  %v622_v3 = vpop.f32.mrb[7].mxu0 }
 0x114   : > { %680 = vst.msk [vmem:[#allocation2 + $0x10] sm:$0xff] %vm526_vm2, %v675_v0  ;;  %v676_v4 = vadd.f32 %v670_v2, %v542_v62  ;;  %v685_v5 = vld [vmem:[#allocation2] sm:$0xff] }
 0x115   : > { %689 = vst.msk [vmem:[%s184_s21] sm:$0xff] %vm526_vm2, %v685_v5 }
 0x116   : > { %681 = vst.msk [vmem:[#allocation2 + $0x18] sm:$0xff] %vm526_vm2, %v676_v4  ;;  %v686_v6 = vld [vmem:[#allocation2 + $0x8] sm:$0xff] }
 0x117   : > { %690 = vst.msk [vmem:[%s184_s21 + $0x8] sm:$0xff] %vm526_vm2, %v686_v6 }
 0x11b   : > { %v687_v7 = vld [vmem:[#allocation2 + $0x10] sm:$0xff] }
 0x11c   : > { %691 = vst.msk [vmem:[%s184_s21 + $0x10] sm:$0xff] %vm526_vm2, %v687_v7 }
 0x11d   : > { %v688_v8 = vld [vmem:[#allocation2 + $0x18] sm:$0xff] }
 0x11e   : > { %692 = vst.msk [vmem:[%s184_s21 + $0x18] sm:$0xff] %vm526_vm2, %v688_v8 }
 0x11f PF: > { %s17_s13 = sadd.s32 1, %s889_s13   ;;  %s978_s11 = smov %s885_s12 }
 0x120   : > { %p14_p5 = scmp.ge.s32.totalorder %s17_s13, 4   ;;  %s979_s12 = smov %s981_s1 }
 0x122   :  { %16 = sbr.rel (!%p14_p5) target bundleno = 3 (0x3), region = 84 }

</bundles_post_ra>
